<compile_context>
chip_gen: v7x
topology: tpu7x:2x2x1
jax: 0.10.0
libtpu: 0.0.40
codegen_flags: <defaults>
</compile_context>

<pallas_src>
import functools
import math

import jax
import jax.numpy as jnp
from jax import lax
from jax.experimental import pallas as pl
from jax.experimental.pallas import tpu as pltpu


# ------------------------------ fused kernel --------------------------------

def _decoder_layer_kernel(
    # per-batch data blocks (1, L/S, E)
    tgt_ref, qpos_ref, mem_ref, pos_ref,
    # self-attention weights
    sa_wqk_ref, sa_bqk_ref, sa_wv_ref, sa_bv_ref, sa_wo_ref, sa_bo_ref,
    # cross-attention weights
    ca_wq_ref, ca_bq_ref, ca_wk_ref, ca_bk_ref, ca_wv_ref, ca_bv_ref,
    ca_wo_ref, ca_bo_ref,
    # feed-forward weights
    w1_ref, b1_ref, w2_ref, b2_ref,
    # layer-norm params, stacked (3, E)
    ln_g_ref, ln_b_ref,
    # output
    o_ref,
    *, nhead, eps):
  f32 = jnp.float32
  tgt = tgt_ref[0].astype(f32)      # (L, E)
  qpos = qpos_ref[0].astype(f32)    # (L, E)
  mem = mem_ref[0].astype(f32)      # (S, E)
  pos = pos_ref[0].astype(f32)      # (S, E)

  E = tgt.shape[-1]
  dh = E // nhead
  scale = 1.0 / math.sqrt(dh)

  def layer_norm(x, idx):
    g = ln_g_ref[idx:idx + 1, :]    # (1, E) static slice
    b = ln_b_ref[idx:idx + 1, :]
    mu = jnp.mean(x, axis=-1, keepdims=True)
    c = x - mu
    var = jnp.mean(c * c, axis=-1, keepdims=True)
    return c * lax.rsqrt(var + eps) * g + b

  def attention_core(q, k, v, wo_ref, bo):
    # q: (L, E), k/v: (S, E).  Per-head attention, out-proj folded into the
    # accumulation so every partial result is full-E lane-dense.
    acc = jnp.zeros(q.shape, f32)
    for h in range(nhead):                      # static unrolled loop
      lo = h * dh
      qh = q[:, lo:lo + dh]
      kh = k[:, lo:lo + dh]
      vh = v[:, lo:lo + dh]
      # contract last dims directly (no materialized k.T)
      s = lax.dot_general(qh, kh, (((1,), (1,)), ((), ())),
                          preferred_element_type=f32) * scale
      s = s - jnp.max(s, axis=-1, keepdims=True)
      p = jnp.exp(s)
      p = p * pl.reciprocal(jnp.sum(p, axis=-1, keepdims=True), approx=True)
      oh = jnp.dot(p, vh, preferred_element_type=f32)          # (L, dh)
      acc = acc + jnp.dot(oh, wo_ref[lo:lo + dh, :],
                          preferred_element_type=f32)          # (L, E)
    return acc + bo

  # --- self attention: q = k = tgt + query_pos, value = tgt ---
  x = tgt + qpos
  qk = jnp.dot(x, sa_wqk_ref[...], preferred_element_type=f32) + sa_bqk_ref[...]  # (L, 2E)
  v = jnp.dot(tgt, sa_wv_ref[...], preferred_element_type=f32) + sa_bv_ref[...]   # (L, E)
  sa = attention_core(qk[:, :E], qk[:, E:], v, sa_wo_ref, sa_bo_ref[...])
  # TODO(synk): dropout1/dropout2/dropout3/dropout treated as identity (eval mode).
  t1 = layer_norm(tgt + sa, 0)

  # --- cross attention: q = t1 + query_pos, k = memory + pos, value = memory ---
  q = jnp.dot(t1 + qpos, ca_wq_ref[...], preferred_element_type=f32) + ca_bq_ref[...]
  k = jnp.dot(mem + pos, ca_wk_ref[...], preferred_element_type=f32) + ca_bk_ref[...]
  v = jnp.dot(mem, ca_wv_ref[...], preferred_element_type=f32) + ca_bv_ref[...]
  ca = attention_core(q, k, v, ca_wo_ref, ca_bo_ref[...])
  t2 = layer_norm(t1 + ca, 1)

  # --- feed forward ---
  h = jnp.maximum(
      jnp.dot(t2, w1_ref[...], preferred_element_type=f32) + b1_ref[...], 0.0)
  y = jnp.dot(h, w2_ref[...], preferred_element_type=f32) + b2_ref[...]
  out = layer_norm(t2 + y, 2)

  o_ref[0] = out.astype(o_ref.dtype)


# ------------------------------ module wrapper -------------------------------

_WEIGHT_ORDER = (
    "sa_w_qk", "sa_b_qk", "sa_w_v", "sa_b_v", "sa_w_o", "sa_b_o",
    "ca_w_q", "ca_b_q", "ca_w_k", "ca_b_k", "ca_w_v", "ca_b_v",
    "ca_w_o", "ca_b_o",
    "w1", "b1", "w2", "b2",
    "ln_g", "ln_b",
)


def prepare_params(params, d_model):
  """One-time weight preparation (transposes / reshapes done ONCE, not per call)."""
  E = d_model
  sa, ca = params["self_attn"], params["cross_attn"]
  w_sa, b_sa = sa["in_proj_weight"], sa["in_proj_bias"]
  w_ca, b_ca = ca["in_proj_weight"], ca["in_proj_bias"]
  return {
      # self-attn: q and k share the same input -> combined (E, 2E) projection
      "sa_w_qk": jnp.transpose(w_sa[:2 * E]),
      "sa_b_qk": b_sa[:2 * E].reshape(1, 2 * E),
      "sa_w_v": jnp.transpose(w_sa[2 * E:]),
      "sa_b_v": b_sa[2 * E:].reshape(1, E),
      "sa_w_o": jnp.transpose(sa["out_proj_weight"]),
      "sa_b_o": sa["out_proj_bias"].reshape(1, E),
      # cross-attn: q/k/v have different inputs -> kept separate
      "ca_w_q": jnp.transpose(w_ca[:E]),
      "ca_b_q": b_ca[:E].reshape(1, E),
      "ca_w_k": jnp.transpose(w_ca[E:2 * E]),
      "ca_b_k": b_ca[E:2 * E].reshape(1, E),
      "ca_w_v": jnp.transpose(w_ca[2 * E:]),
      "ca_b_v": b_ca[2 * E:].reshape(1, E),
      "ca_w_o": jnp.transpose(ca["out_proj_weight"]),
      "ca_b_o": ca["out_proj_bias"].reshape(1, E),
      # FFN
      "w1": jnp.transpose(params["linear1_w"]),
      "b1": params["linear1_b"].reshape(1, -1),
      "w2": jnp.transpose(params["linear2_w"]),
      "b2": params["linear2_b"].reshape(1, E),
      # LayerNorms stacked to cut arg count
      "ln_g": jnp.stack([params["norm1_w"], params["norm2_w"], params["norm3_w"]]),
      "ln_b": jnp.stack([params["norm1_b"], params["norm2_b"], params["norm3_b"]]),
  }


def decoder_layer_forward(prepared, tgt, memory, pos=None, query_pos=None,
                          nhead=4, eps=1e-5):
  """forward_post semantics (normalize_before=False). tgt/memory are (L/S, N, E)."""
  L, N, E = tgt.shape
  S = memory.shape[0]
  if query_pos is None:
    query_pos = jnp.zeros_like(tgt)
  if pos is None:
    pos = jnp.zeros_like(memory)

  # One-time layout plumbing to batch-first so the grid can shard over batch.
  tgt_b = jnp.transpose(tgt, (1, 0, 2))        # (N, L, E)
  qpos_b = jnp.transpose(query_pos, (1, 0, 2))
  mem_b = jnp.transpose(memory, (1, 0, 2))     # (N, S, E)
  pos_b = jnp.transpose(pos, (1, 0, 2))

  weights = [prepared[name] for name in _WEIGHT_ORDER]

  def data_spec(seq_len):
    return pl.BlockSpec((1, seq_len, E), lambda n: (n, 0, 0))

  def weight_spec(arr):
    return pl.BlockSpec(arr.shape, lambda n: (0, 0))

  in_specs = ([data_spec(L), data_spec(L), data_spec(S), data_spec(S)]
              + [weight_spec(w) for w in weights])

  out_b = pl.pallas_call(
      functools.partial(_decoder_layer_kernel, nhead=nhead, eps=eps),
      grid=(N,),
      in_specs=in_specs,
      out_specs=pl.BlockSpec((1, L, E), lambda n: (n, 0, 0)),
      out_shape=jax.ShapeDtypeStruct((N, L, E), tgt.dtype),
      compiler_params=pltpu.CompilerParams(dimension_semantics=("parallel",)),
  )(tgt_b, qpos_b, mem_b, pos_b, *weights)

  return jnp.transpose(out_b, (1, 0, 2))       # back to (L, N, E)


# --------------------------------- params ------------------------------------

def init_params(key, d_model, nhead, dim_feedforward):
  ks = jax.random.split(key, 8)

  def u(k, shape, bound):
    return jax.random.uniform(k, shape, jnp.float32, -bound, bound)

  def mha_params(k):
    k1, k2 = jax.random.split(k)
    bound = 1.0 / math.sqrt(d_model)
    return {
        "in_proj_weight": u(k1, (3 * d_model, d_model), bound),
        "in_proj_bias": jnp.zeros((3 * d_model,), jnp.float32),
        "out_proj_weight": u(k2, (d_model, d_model), bound),
        "out_proj_bias": jnp.zeros((d_model,), jnp.float32),
    }

  return {
      "self_attn": mha_params(ks[0]),
      "cross_attn": mha_params(ks[1]),
      "linear1_w": u(ks[2], (dim_feedforward, d_model), 1.0 / math.sqrt(d_model)),
      "linear1_b": u(ks[3], (dim_feedforward,), 1.0 / math.sqrt(d_model)),
      "linear2_w": u(ks[4], (d_model, dim_feedforward), 1.0 / math.sqrt(dim_feedforward)),
      "linear2_b": u(ks[5], (d_model,), 1.0 / math.sqrt(dim_feedforward)),
      "norm1_w": jnp.ones((d_model,), jnp.float32),
      "norm1_b": jnp.zeros((d_model,), jnp.float32),
      "norm2_w": jnp.ones((d_model,), jnp.float32),
      "norm2_b": jnp.zeros((d_model,), jnp.float32),
      "norm3_w": jnp.ones((d_model,), jnp.float32),
      "norm3_b": jnp.zeros((d_model,), jnp.float32),
  }


# ----------------------------------- main -------------------------------------

if __name__ == "__main__":
  d_model, nhead, dim_feedforward = 32, 4, 64
  L, S, N = 8, 16, 2  # target len, memory len, batch

  key = jax.random.PRNGKey(0)
  kp, k1, k2, k3, k4 = jax.random.split(key, 5)
  params = init_params(kp, d_model, nhead, dim_feedforward)
  prepared = prepare_params(params, d_model)   # one-time weight prep

  tgt = jax.random.normal(k1, (L, N, d_model), jnp.float32)
  memory = jax.random.normal(k2, (S, N, d_model), jnp.float32)
  query_pos = jax.random.normal(k3, (L, N, d_model), jnp.float32)
  pos = jax.random.normal(k4, (S, N, d_model), jnp.float32)

  out = decoder_layer_forward(prepared, tgt, memory, pos=pos,
                              query_pos=query_pos, nhead=nhead)
  out = jax.block_until_ready(out)
  assert out.shape == (L, N, d_model) and out.dtype == jnp.float32
  print("KERNEL_OK")
</pallas_src>

<mosaic_0001>
module attributes {stable_mosaic.version = 11 : i64} {
  func.func @_decoder_layer_kernel(%arg0: i32, %arg1: memref<1x8x32xf32, #tpu.memory_space<vmem>>, %arg2: memref<1x8x32xf32, #tpu.memory_space<vmem>>, %arg3: memref<1x16x32xf32, #tpu.memory_space<vmem>>, %arg4: memref<1x16x32xf32, #tpu.memory_space<vmem>>, %arg5: memref<32x64xf32, #tpu.memory_space<vmem>>, %arg6: memref<1x64xf32, #tpu.memory_space<vmem>>, %arg7: memref<32x32xf32, #tpu.memory_space<vmem>>, %arg8: memref<1x32xf32, #tpu.memory_space<vmem>>, %arg9: memref<32x32xf32, #tpu.memory_space<vmem>>, %arg10: memref<1x32xf32, #tpu.memory_space<vmem>>, %arg11: memref<32x32xf32, #tpu.memory_space<vmem>>, %arg12: memref<1x32xf32, #tpu.memory_space<vmem>>, %arg13: memref<32x32xf32, #tpu.memory_space<vmem>>, %arg14: memref<1x32xf32, #tpu.memory_space<vmem>>, %arg15: memref<32x32xf32, #tpu.memory_space<vmem>>, %arg16: memref<1x32xf32, #tpu.memory_space<vmem>>, %arg17: memref<32x32xf32, #tpu.memory_space<vmem>>, %arg18: memref<1x32xf32, #tpu.memory_space<vmem>>, %arg19: memref<32x64xf32, #tpu.memory_space<vmem>>, %arg20: memref<1x64xf32, #tpu.memory_space<vmem>>, %arg21: memref<64x32xf32, #tpu.memory_space<vmem>>, %arg22: memref<1x32xf32, #tpu.memory_space<vmem>>, %arg23: memref<3x32xf32, #tpu.memory_space<vmem>>, %arg24: memref<3x32xf32, #tpu.memory_space<vmem>>, %arg25: memref<1x8x32xf32, #tpu.memory_space<vmem>>) attributes {dimension_semantics = [#tpu.dimension_semantics<parallel>], iteration_bounds = array<i64: 2>, scalar_prefetch = 0 : i64, scratch_operands = 0 : i64, tpu.core_type = #tpu.core_type<tc>, window_params = [{transform_indices = @transform_0, window_bounds = array<i64: 1, 8, 32>}, {transform_indices = @transform_1, window_bounds = array<i64: 1, 8, 32>}, {transform_indices = @transform_2, window_bounds = array<i64: 1, 16, 32>}, {transform_indices = @transform_3, window_bounds = array<i64: 1, 16, 32>}, {pipeline_mode = #tpu.pipeline_mode<synchronous>, transform_indices = @transform_4, window_bounds = array<i64: 32, 64>}, {pipeline_mode = #tpu.pipeline_mode<synchronous>, transform_indices = @transform_5, window_bounds = array<i64: 1, 64>}, {pipeline_mode = #tpu.pipeline_mode<synchronous>, transform_indices = @transform_6, window_bounds = array<i64: 32, 32>}, {pipeline_mode = #tpu.pipeline_mode<synchronous>, transform_indices = @transform_7, window_bounds = array<i64: 1, 32>}, {pipeline_mode = #tpu.pipeline_mode<synchronous>, transform_indices = @transform_8, window_bounds = array<i64: 32, 32>}, {pipeline_mode = #tpu.pipeline_mode<synchronous>, transform_indices = @transform_9, window_bounds = array<i64: 1, 32>}, {pipeline_mode = #tpu.pipeline_mode<synchronous>, transform_indices = @transform_10, window_bounds = array<i64: 32, 32>}, {pipeline_mode = #tpu.pipeline_mode<synchronous>, transform_indices = @transform_11, window_bounds = array<i64: 1, 32>}, {pipeline_mode = #tpu.pipeline_mode<synchronous>, transform_indices = @transform_12, window_bounds = array<i64: 32, 32>}, {pipeline_mode = #tpu.pipeline_mode<synchronous>, transform_indices = @transform_13, window_bounds = array<i64: 1, 32>}, {pipeline_mode = #tpu.pipeline_mode<synchronous>, transform_indices = @transform_14, window_bounds = array<i64: 32, 32>}, {pipeline_mode = #tpu.pipeline_mode<synchronous>, transform_indices = @transform_15, window_bounds = array<i64: 1, 32>}, {pipeline_mode = #tpu.pipeline_mode<synchronous>, transform_indices = @transform_16, window_bounds = array<i64: 32, 32>}, {pipeline_mode = #tpu.pipeline_mode<synchronous>, transform_indices = @transform_17, window_bounds = array<i64: 1, 32>}, {pipeline_mode = #tpu.pipeline_mode<synchronous>, transform_indices = @transform_18, window_bounds = array<i64: 32, 64>}, {pipeline_mode = #tpu.pipeline_mode<synchronous>, transform_indices = @transform_19, window_bounds = array<i64: 1, 64>}, {pipeline_mode = #tpu.pipeline_mode<synchronous>, transform_indices = @transform_20, window_bounds = array<i64: 64, 32>}, {pipeline_mode = #tpu.pipeline_mode<synchronous>, transform_indices = @transform_21, window_bounds = array<i64: 1, 32>}, {pipeline_mode = #tpu.pipeline_mode<synchronous>, transform_indices = @transform_22, window_bounds = array<i64: 3, 32>}, {pipeline_mode = #tpu.pipeline_mode<synchronous>, transform_indices = @transform_23, window_bounds = array<i64: 3, 32>}, {transform_indices = @transform_24, window_bounds = array<i64: 1, 8, 32>}]} {
    %c0 = arith.constant 0 : index
    %c0_0 = arith.constant 0 : index
    %c0_1 = arith.constant 0 : index
    %0 = vector.load %arg1[%c0, %c0_0, %c0_1] : memref<1x8x32xf32, #tpu.memory_space<vmem>>, vector<1x8x32xf32>
    %1 = vector.shape_cast %0 : vector<1x8x32xf32> to vector<8x32xf32>
    %c0_2 = arith.constant 0 : index
    %c0_3 = arith.constant 0 : index
    %c0_4 = arith.constant 0 : index
    %2 = vector.load %arg2[%c0_2, %c0_3, %c0_4] : memref<1x8x32xf32, #tpu.memory_space<vmem>>, vector<1x8x32xf32>
    %3 = vector.shape_cast %2 : vector<1x8x32xf32> to vector<8x32xf32>
    %c0_5 = arith.constant 0 : index
    %c0_6 = arith.constant 0 : index
    %c0_7 = arith.constant 0 : index
    %4 = vector.load %arg3[%c0_5, %c0_6, %c0_7] : memref<1x16x32xf32, #tpu.memory_space<vmem>>, vector<1x16x32xf32>
    %5 = vector.shape_cast %4 : vector<1x16x32xf32> to vector<16x32xf32>
    %c0_8 = arith.constant 0 : index
    %c0_9 = arith.constant 0 : index
    %c0_10 = arith.constant 0 : index
    %6 = vector.load %arg4[%c0_8, %c0_9, %c0_10] : memref<1x16x32xf32, #tpu.memory_space<vmem>>, vector<1x16x32xf32>
    %7 = vector.shape_cast %6 : vector<1x16x32xf32> to vector<16x32xf32>
    %8 = arith.addf %1, %3 : vector<8x32xf32>
    %c0_11 = arith.constant 0 : index
    %c0_12 = arith.constant 0 : index
    %9 = vector.load %arg5[%c0_11, %c0_12] : memref<32x64xf32, #tpu.memory_space<vmem>>, vector<32x64xf32>
    %cst = arith.constant dense<0.000000e+00> : vector<8x64xf32>
    %10 = tpu.matmul %8, %9, %cst {dimension_numbers = #tpu.dot_dimension_numbers<[1], [0], [0], [1], [0, 0, 1, 1], [], []>} : vector<8x32xf32>, vector<32x64xf32>, vector<8x64xf32> -> vector<8x64xf32>
    %c0_13 = arith.constant 0 : index
    %c0_14 = arith.constant 0 : index
    %11 = vector.load %arg6[%c0_13, %c0_14] : memref<1x64xf32, #tpu.memory_space<vmem>>, vector<1x64xf32>
    %12 = vector.broadcast %11 : vector<1x64xf32> to vector<8x64xf32>
    %13 = arith.addf %10, %12 : vector<8x64xf32>
    %c0_15 = arith.constant 0 : index
    %c0_16 = arith.constant 0 : index
    %14 = vector.load %arg7[%c0_15, %c0_16] : memref<32x32xf32, #tpu.memory_space<vmem>>, vector<32x32xf32>
    %cst_17 = arith.constant dense<0.000000e+00> : vector<8x32xf32>
    %15 = tpu.matmul %1, %14, %cst_17 {dimension_numbers = #tpu.dot_dimension_numbers<[1], [0], [0], [1], [0, 0, 1, 1], [], []>} : vector<8x32xf32>, vector<32x32xf32>, vector<8x32xf32> -> vector<8x32xf32>
    %c0_18 = arith.constant 0 : index
    %c0_19 = arith.constant 0 : index
    %16 = vector.load %arg8[%c0_18, %c0_19] : memref<1x32xf32, #tpu.memory_space<vmem>>, vector<1x32xf32>
    %17 = vector.broadcast %16 : vector<1x32xf32> to vector<8x32xf32>
    %18 = arith.addf %15, %17 : vector<8x32xf32>
    %19 = vector.extract_strided_slice %13 {offsets = [0, 0], sizes = [8, 32], strides = [1, 1]} : vector<8x64xf32> to vector<8x32xf32>
    %20 = vector.extract_strided_slice %13 {offsets = [0, 32], sizes = [8, 32], strides = [1, 1]} : vector<8x64xf32> to vector<8x32xf32>
    %c0_20 = arith.constant 0 : index
    %c0_21 = arith.constant 0 : index
    %21 = vector.load %arg10[%c0_20, %c0_21] : memref<1x32xf32, #tpu.memory_space<vmem>>, vector<1x32xf32>
    %cst_22 = arith.constant 0.000000e+00 : f32
    %22 = vector.broadcast %cst_22 : f32 to vector<8x32xf32>
    %23 = vector.extract_strided_slice %19 {offsets = [0, 0], sizes = [8, 8], strides = [1, 1]} : vector<8x32xf32> to vector<8x8xf32>
    %24 = vector.extract_strided_slice %20 {offsets = [0, 0], sizes = [8, 8], strides = [1, 1]} : vector<8x32xf32> to vector<8x8xf32>
    %25 = vector.extract_strided_slice %18 {offsets = [0, 0], sizes = [8, 8], strides = [1, 1]} : vector<8x32xf32> to vector<8x8xf32>
    %cst_23 = arith.constant dense<0.000000e+00> : vector<8x8xf32>
    %26 = tpu.matmul %23, %24, %cst_23 {dimension_numbers = #tpu.dot_dimension_numbers<[1], [1], [0], [0], [0, 0, 1, 0], [], []>} : vector<8x8xf32>, vector<8x8xf32>, vector<8x8xf32> -> vector<8x8xf32>
    %cst_24 = arith.constant 0.353553385 : f32
    %27 = vector.broadcast %cst_24 : f32 to vector<8x8xf32>
    %28 = arith.mulf %26, %27 : vector<8x8xf32>
    %cst_25 = arith.constant dense<0xFF800000> : vector<8xf32>
    %29 = vector.multi_reduction <maximumf>, %28, %cst_25 [1] : vector<8x8xf32> to vector<8xf32>
    %30 = vector.shape_cast %29 : vector<8xf32> to vector<8x1xf32>
    %31 = vector.broadcast %30 : vector<8x1xf32> to vector<8x8xf32>
    %32 = arith.subf %28, %31 : vector<8x8xf32>
    %33 = math.exp %32 : vector<8x8xf32>
    %cst_26 = arith.constant dense<0.000000e+00> : vector<8xf32>
    %34 = vector.multi_reduction <add>, %33, %cst_26 [1] : vector<8x8xf32> to vector<8xf32>
    %35 = vector.shape_cast %34 : vector<8xf32> to vector<8x1xf32>
    %36 = tpu.reciprocal %35 {approx = true} : vector<8x1xf32> -> vector<8x1xf32>
    %37 = vector.broadcast %36 : vector<8x1xf32> to vector<8x8xf32>
    %38 = arith.mulf %33, %37 : vector<8x8xf32>
    %cst_27 = arith.constant dense<0.000000e+00> : vector<8x8xf32>
    %39 = tpu.matmul %38, %25, %cst_27 {dimension_numbers = #tpu.dot_dimension_numbers<[1], [0], [0], [1], [0, 0, 1, 1], [], []>} : vector<8x8xf32>, vector<8x8xf32>, vector<8x8xf32> -> vector<8x8xf32>
    %c0_28 = arith.constant 0 : index
    %c0_29 = arith.constant 0 : index
    %40 = vector.load %arg9[%c0_28, %c0_29] : memref<32x32xf32, #tpu.memory_space<vmem>>, vector<8x32xf32>
    %cst_30 = arith.constant dense<0.000000e+00> : vector<8x32xf32>
    %41 = tpu.matmul %39, %40, %cst_30 {dimension_numbers = #tpu.dot_dimension_numbers<[1], [0], [0], [1], [0, 0, 1, 1], [], []>} : vector<8x8xf32>, vector<8x32xf32>, vector<8x32xf32> -> vector<8x32xf32>
    %42 = arith.addf %22, %41 : vector<8x32xf32>
    %43 = vector.extract_strided_slice %19 {offsets = [0, 8], sizes = [8, 8], strides = [1, 1]} : vector<8x32xf32> to vector<8x8xf32>
    %44 = vector.extract_strided_slice %20 {offsets = [0, 8], sizes = [8, 8], strides = [1, 1]} : vector<8x32xf32> to vector<8x8xf32>
    %45 = vector.extract_strided_slice %18 {offsets = [0, 8], sizes = [8, 8], strides = [1, 1]} : vector<8x32xf32> to vector<8x8xf32>
    %cst_31 = arith.constant dense<0.000000e+00> : vector<8x8xf32>
    %46 = tpu.matmul %43, %44, %cst_31 {dimension_numbers = #tpu.dot_dimension_numbers<[1], [1], [0], [0], [0, 0, 1, 0], [], []>} : vector<8x8xf32>, vector<8x8xf32>, vector<8x8xf32> -> vector<8x8xf32>
    %cst_32 = arith.constant 0.353553385 : f32
    %47 = vector.broadcast %cst_32 : f32 to vector<8x8xf32>
    %48 = arith.mulf %46, %47 : vector<8x8xf32>
    %cst_33 = arith.constant dense<0xFF800000> : vector<8xf32>
    %49 = vector.multi_reduction <maximumf>, %48, %cst_33 [1] : vector<8x8xf32> to vector<8xf32>
    %50 = vector.shape_cast %49 : vector<8xf32> to vector<8x1xf32>
    %51 = vector.broadcast %50 : vector<8x1xf32> to vector<8x8xf32>
    %52 = arith.subf %48, %51 : vector<8x8xf32>
    %53 = math.exp %52 : vector<8x8xf32>
    %cst_34 = arith.constant dense<0.000000e+00> : vector<8xf32>
    %54 = vector.multi_reduction <add>, %53, %cst_34 [1] : vector<8x8xf32> to vector<8xf32>
    %55 = vector.shape_cast %54 : vector<8xf32> to vector<8x1xf32>
    %56 = tpu.reciprocal %55 {approx = true} : vector<8x1xf32> -> vector<8x1xf32>
    %57 = vector.broadcast %56 : vector<8x1xf32> to vector<8x8xf32>
    %58 = arith.mulf %53, %57 : vector<8x8xf32>
    %cst_35 = arith.constant dense<0.000000e+00> : vector<8x8xf32>
    %59 = tpu.matmul %58, %45, %cst_35 {dimension_numbers = #tpu.dot_dimension_numbers<[1], [0], [0], [1], [0, 0, 1, 1], [], []>} : vector<8x8xf32>, vector<8x8xf32>, vector<8x8xf32> -> vector<8x8xf32>
    %c8 = arith.constant 8 : index
    %c0_36 = arith.constant 0 : index
    %60 = vector.load %arg9[%c8, %c0_36] : memref<32x32xf32, #tpu.memory_space<vmem>>, vector<8x32xf32>
    %cst_37 = arith.constant dense<0.000000e+00> : vector<8x32xf32>
    %61 = tpu.matmul %59, %60, %cst_37 {dimension_numbers = #tpu.dot_dimension_numbers<[1], [0], [0], [1], [0, 0, 1, 1], [], []>} : vector<8x8xf32>, vector<8x32xf32>, vector<8x32xf32> -> vector<8x32xf32>
    %62 = arith.addf %42, %61 : vector<8x32xf32>
    %63 = vector.extract_strided_slice %19 {offsets = [0, 16], sizes = [8, 8], strides = [1, 1]} : vector<8x32xf32> to vector<8x8xf32>
    %64 = vector.extract_strided_slice %20 {offsets = [0, 16], sizes = [8, 8], strides = [1, 1]} : vector<8x32xf32> to vector<8x8xf32>
    %65 = vector.extract_strided_slice %18 {offsets = [0, 16], sizes = [8, 8], strides = [1, 1]} : vector<8x32xf32> to vector<8x8xf32>
    %cst_38 = arith.constant dense<0.000000e+00> : vector<8x8xf32>
    %66 = tpu.matmul %63, %64, %cst_38 {dimension_numbers = #tpu.dot_dimension_numbers<[1], [1], [0], [0], [0, 0, 1, 0], [], []>} : vector<8x8xf32>, vector<8x8xf32>, vector<8x8xf32> -> vector<8x8xf32>
    %cst_39 = arith.constant 0.353553385 : f32
    %67 = vector.broadcast %cst_39 : f32 to vector<8x8xf32>
    %68 = arith.mulf %66, %67 : vector<8x8xf32>
    %cst_40 = arith.constant dense<0xFF800000> : vector<8xf32>
    %69 = vector.multi_reduction <maximumf>, %68, %cst_40 [1] : vector<8x8xf32> to vector<8xf32>
    %70 = vector.shape_cast %69 : vector<8xf32> to vector<8x1xf32>
    %71 = vector.broadcast %70 : vector<8x1xf32> to vector<8x8xf32>
    %72 = arith.subf %68, %71 : vector<8x8xf32>
    %73 = math.exp %72 : vector<8x8xf32>
    %cst_41 = arith.constant dense<0.000000e+00> : vector<8xf32>
    %74 = vector.multi_reduction <add>, %73, %cst_41 [1] : vector<8x8xf32> to vector<8xf32>
    %75 = vector.shape_cast %74 : vector<8xf32> to vector<8x1xf32>
    %76 = tpu.reciprocal %75 {approx = true} : vector<8x1xf32> -> vector<8x1xf32>
    %77 = vector.broadcast %76 : vector<8x1xf32> to vector<8x8xf32>
    %78 = arith.mulf %73, %77 : vector<8x8xf32>
    %cst_42 = arith.constant dense<0.000000e+00> : vector<8x8xf32>
    %79 = tpu.matmul %78, %65, %cst_42 {dimension_numbers = #tpu.dot_dimension_numbers<[1], [0], [0], [1], [0, 0, 1, 1], [], []>} : vector<8x8xf32>, vector<8x8xf32>, vector<8x8xf32> -> vector<8x8xf32>
    %c16 = arith.constant 16 : index
    %c0_43 = arith.constant 0 : index
    %80 = vector.load %arg9[%c16, %c0_43] : memref<32x32xf32, #tpu.memory_space<vmem>>, vector<8x32xf32>
    %cst_44 = arith.constant dense<0.000000e+00> : vector<8x32xf32>
    %81 = tpu.matmul %79, %80, %cst_44 {dimension_numbers = #tpu.dot_dimension_numbers<[1], [0], [0], [1], [0, 0, 1, 1], [], []>} : vector<8x8xf32>, vector<8x32xf32>, vector<8x32xf32> -> vector<8x32xf32>
    %82 = arith.addf %62, %81 : vector<8x32xf32>
    %83 = vector.extract_strided_slice %19 {offsets = [0, 24], sizes = [8, 8], strides = [1, 1]} : vector<8x32xf32> to vector<8x8xf32>
    %84 = vector.extract_strided_slice %20 {offsets = [0, 24], sizes = [8, 8], strides = [1, 1]} : vector<8x32xf32> to vector<8x8xf32>
    %85 = vector.extract_strided_slice %18 {offsets = [0, 24], sizes = [8, 8], strides = [1, 1]} : vector<8x32xf32> to vector<8x8xf32>
    %cst_45 = arith.constant dense<0.000000e+00> : vector<8x8xf32>
    %86 = tpu.matmul %83, %84, %cst_45 {dimension_numbers = #tpu.dot_dimension_numbers<[1], [1], [0], [0], [0, 0, 1, 0], [], []>} : vector<8x8xf32>, vector<8x8xf32>, vector<8x8xf32> -> vector<8x8xf32>
    %cst_46 = arith.constant 0.353553385 : f32
    %87 = vector.broadcast %cst_46 : f32 to vector<8x8xf32>
    %88 = arith.mulf %86, %87 : vector<8x8xf32>
    %cst_47 = arith.constant dense<0xFF800000> : vector<8xf32>
    %89 = vector.multi_reduction <maximumf>, %88, %cst_47 [1] : vector<8x8xf32> to vector<8xf32>
    %90 = vector.shape_cast %89 : vector<8xf32> to vector<8x1xf32>
    %91 = vector.broadcast %90 : vector<8x1xf32> to vector<8x8xf32>
    %92 = arith.subf %88, %91 : vector<8x8xf32>
    %93 = math.exp %92 : vector<8x8xf32>
    %cst_48 = arith.constant dense<0.000000e+00> : vector<8xf32>
    %94 = vector.multi_reduction <add>, %93, %cst_48 [1] : vector<8x8xf32> to vector<8xf32>
    %95 = vector.shape_cast %94 : vector<8xf32> to vector<8x1xf32>
    %96 = tpu.reciprocal %95 {approx = true} : vector<8x1xf32> -> vector<8x1xf32>
    %97 = vector.broadcast %96 : vector<8x1xf32> to vector<8x8xf32>
    %98 = arith.mulf %93, %97 : vector<8x8xf32>
    %cst_49 = arith.constant dense<0.000000e+00> : vector<8x8xf32>
    %99 = tpu.matmul %98, %85, %cst_49 {dimension_numbers = #tpu.dot_dimension_numbers<[1], [0], [0], [1], [0, 0, 1, 1], [], []>} : vector<8x8xf32>, vector<8x8xf32>, vector<8x8xf32> -> vector<8x8xf32>
    %c24 = arith.constant 24 : index
    %c0_50 = arith.constant 0 : index
    %100 = vector.load %arg9[%c24, %c0_50] : memref<32x32xf32, #tpu.memory_space<vmem>>, vector<8x32xf32>
    %cst_51 = arith.constant dense<0.000000e+00> : vector<8x32xf32>
    %101 = tpu.matmul %99, %100, %cst_51 {dimension_numbers = #tpu.dot_dimension_numbers<[1], [0], [0], [1], [0, 0, 1, 1], [], []>} : vector<8x8xf32>, vector<8x32xf32>, vector<8x32xf32> -> vector<8x32xf32>
    %102 = arith.addf %82, %101 : vector<8x32xf32>
    %103 = vector.broadcast %21 : vector<1x32xf32> to vector<8x32xf32>
    %104 = arith.addf %102, %103 : vector<8x32xf32>
    %105 = arith.addf %1, %104 : vector<8x32xf32>
    %c0_52 = arith.constant 0 : index
    %c0_53 = arith.constant 0 : index
    %106 = vector.load %arg23[%c0_52, %c0_53] : memref<3x32xf32, #tpu.memory_space<vmem>>, vector<1x32xf32>
    %c0_54 = arith.constant 0 : index
    %c0_55 = arith.constant 0 : index
    %107 = vector.load %arg24[%c0_54, %c0_55] : memref<3x32xf32, #tpu.memory_space<vmem>>, vector<1x32xf32>
    %cst_56 = arith.constant dense<0.000000e+00> : vector<8xf32>
    %108 = vector.multi_reduction <add>, %105, %cst_56 [1] : vector<8x32xf32> to vector<8xf32>
    %109 = vector.shape_cast %108 : vector<8xf32> to vector<8x1xf32>
    %cst_57 = arith.constant 3.200000e+01 : f32
    %110 = vector.broadcast %cst_57 : f32 to vector<8x1xf32>
    %111 = arith.divf %109, %110 : vector<8x1xf32>
    %112 = vector.broadcast %111 : vector<8x1xf32> to vector<8x32xf32>
    %113 = arith.subf %105, %112 : vector<8x32xf32>
    %114 = arith.mulf %113, %113 : vector<8x32xf32>
    %cst_58 = arith.constant dense<0.000000e+00> : vector<8xf32>
    %115 = vector.multi_reduction <add>, %114, %cst_58 [1] : vector<8x32xf32> to vector<8xf32>
    %116 = vector.shape_cast %115 : vector<8xf32> to vector<8x1xf32>
    %cst_59 = arith.constant 3.200000e+01 : f32
    %117 = vector.broadcast %cst_59 : f32 to vector<8x1xf32>
    %118 = arith.divf %116, %117 : vector<8x1xf32>
    %cst_60 = arith.constant 9.99999974E-6 : f32
    %119 = vector.broadcast %cst_60 : f32 to vector<8x1xf32>
    %120 = arith.addf %118, %119 : vector<8x1xf32>
    %121 = math.rsqrt %120 : vector<8x1xf32>
    %122 = vector.broadcast %121 : vector<8x1xf32> to vector<8x32xf32>
    %123 = arith.mulf %113, %122 : vector<8x32xf32>
    %124 = vector.broadcast %106 : vector<1x32xf32> to vector<8x32xf32>
    %125 = arith.mulf %123, %124 : vector<8x32xf32>
    %126 = vector.broadcast %107 : vector<1x32xf32> to vector<8x32xf32>
    %127 = arith.addf %125, %126 : vector<8x32xf32>
    %128 = arith.addf %127, %3 : vector<8x32xf32>
    %c0_61 = arith.constant 0 : index
    %c0_62 = arith.constant 0 : index
    %129 = vector.load %arg11[%c0_61, %c0_62] : memref<32x32xf32, #tpu.memory_space<vmem>>, vector<32x32xf32>
    %cst_63 = arith.constant dense<0.000000e+00> : vector<8x32xf32>
    %130 = tpu.matmul %128, %129, %cst_63 {dimension_numbers = #tpu.dot_dimension_numbers<[1], [0], [0], [1], [0, 0, 1, 1], [], []>} : vector<8x32xf32>, vector<32x32xf32>, vector<8x32xf32> -> vector<8x32xf32>
    %c0_64 = arith.constant 0 : index
    %c0_65 = arith.constant 0 : index
    %131 = vector.load %arg12[%c0_64, %c0_65] : memref<1x32xf32, #tpu.memory_space<vmem>>, vector<1x32xf32>
    %132 = vector.broadcast %131 : vector<1x32xf32> to vector<8x32xf32>
    %133 = arith.addf %130, %132 : vector<8x32xf32>
    %134 = arith.addf %5, %7 : vector<16x32xf32>
    %c0_66 = arith.constant 0 : index
    %c0_67 = arith.constant 0 : index
    %135 = vector.load %arg13[%c0_66, %c0_67] : memref<32x32xf32, #tpu.memory_space<vmem>>, vector<32x32xf32>
    %cst_68 = arith.constant dense<0.000000e+00> : vector<16x32xf32>
    %136 = tpu.matmul %134, %135, %cst_68 {dimension_numbers = #tpu.dot_dimension_numbers<[1], [0], [0], [1], [0, 0, 1, 1], [], []>} : vector<16x32xf32>, vector<32x32xf32>, vector<16x32xf32> -> vector<16x32xf32>
    %c0_69 = arith.constant 0 : index
    %c0_70 = arith.constant 0 : index
    %137 = vector.load %arg14[%c0_69, %c0_70] : memref<1x32xf32, #tpu.memory_space<vmem>>, vector<1x32xf32>
    %138 = vector.broadcast %137 : vector<1x32xf32> to vector<16x32xf32>
    %139 = arith.addf %136, %138 : vector<16x32xf32>
    %c0_71 = arith.constant 0 : index
    %c0_72 = arith.constant 0 : index
    %140 = vector.load %arg15[%c0_71, %c0_72] : memref<32x32xf32, #tpu.memory_space<vmem>>, vector<32x32xf32>
    %cst_73 = arith.constant dense<0.000000e+00> : vector<16x32xf32>
    %141 = tpu.matmul %5, %140, %cst_73 {dimension_numbers = #tpu.dot_dimension_numbers<[1], [0], [0], [1], [0, 0, 1, 1], [], []>} : vector<16x32xf32>, vector<32x32xf32>, vector<16x32xf32> -> vector<16x32xf32>
    %c0_74 = arith.constant 0 : index
    %c0_75 = arith.constant 0 : index
    %142 = vector.load %arg16[%c0_74, %c0_75] : memref<1x32xf32, #tpu.memory_space<vmem>>, vector<1x32xf32>
    %143 = vector.broadcast %142 : vector<1x32xf32> to vector<16x32xf32>
    %144 = arith.addf %141, %143 : vector<16x32xf32>
    %c0_76 = arith.constant 0 : index
    %c0_77 = arith.constant 0 : index
    %145 = vector.load %arg18[%c0_76, %c0_77] : memref<1x32xf32, #tpu.memory_space<vmem>>, vector<1x32xf32>
    %cst_78 = arith.constant 0.000000e+00 : f32
    %146 = vector.broadcast %cst_78 : f32 to vector<8x32xf32>
    %147 = vector.extract_strided_slice %133 {offsets = [0, 0], sizes = [8, 8], strides = [1, 1]} : vector<8x32xf32> to vector<8x8xf32>
    %148 = vector.extract_strided_slice %139 {offsets = [0, 0], sizes = [16, 8], strides = [1, 1]} : vector<16x32xf32> to vector<16x8xf32>
    %149 = vector.extract_strided_slice %144 {offsets = [0, 0], sizes = [16, 8], strides = [1, 1]} : vector<16x32xf32> to vector<16x8xf32>
    %cst_79 = arith.constant dense<0.000000e+00> : vector<8x16xf32>
    %150 = tpu.matmul %147, %148, %cst_79 {dimension_numbers = #tpu.dot_dimension_numbers<[1], [1], [0], [0], [0, 0, 1, 0], [], []>} : vector<8x8xf32>, vector<16x8xf32>, vector<8x16xf32> -> vector<8x16xf32>
    %cst_80 = arith.constant 0.353553385 : f32
    %151 = vector.broadcast %cst_80 : f32 to vector<8x16xf32>
    %152 = arith.mulf %150, %151 : vector<8x16xf32>
    %cst_81 = arith.constant dense<0xFF800000> : vector<8xf32>
    %153 = vector.multi_reduction <maximumf>, %152, %cst_81 [1] : vector<8x16xf32> to vector<8xf32>
    %154 = vector.shape_cast %153 : vector<8xf32> to vector<8x1xf32>
    %155 = vector.broadcast %154 : vector<8x1xf32> to vector<8x16xf32>
    %156 = arith.subf %152, %155 : vector<8x16xf32>
    %157 = math.exp %156 : vector<8x16xf32>
    %cst_82 = arith.constant dense<0.000000e+00> : vector<8xf32>
    %158 = vector.multi_reduction <add>, %157, %cst_82 [1] : vector<8x16xf32> to vector<8xf32>
    %159 = vector.shape_cast %158 : vector<8xf32> to vector<8x1xf32>
    %160 = tpu.reciprocal %159 {approx = true} : vector<8x1xf32> -> vector<8x1xf32>
    %161 = vector.broadcast %160 : vector<8x1xf32> to vector<8x16xf32>
    %162 = arith.mulf %157, %161 : vector<8x16xf32>
    %cst_83 = arith.constant dense<0.000000e+00> : vector<8x8xf32>
    %163 = tpu.matmul %162, %149, %cst_83 {dimension_numbers = #tpu.dot_dimension_numbers<[1], [0], [0], [1], [0, 0, 1, 1], [], []>} : vector<8x16xf32>, vector<16x8xf32>, vector<8x8xf32> -> vector<8x8xf32>
    %c0_84 = arith.constant 0 : index
    %c0_85 = arith.constant 0 : index
    %164 = vector.load %arg17[%c0_84, %c0_85] : memref<32x32xf32, #tpu.memory_space<vmem>>, vector<8x32xf32>
    %cst_86 = arith.constant dense<0.000000e+00> : vector<8x32xf32>
    %165 = tpu.matmul %163, %164, %cst_86 {dimension_numbers = #tpu.dot_dimension_numbers<[1], [0], [0], [1], [0, 0, 1, 1], [], []>} : vector<8x8xf32>, vector<8x32xf32>, vector<8x32xf32> -> vector<8x32xf32>
    %166 = arith.addf %146, %165 : vector<8x32xf32>
    %167 = vector.extract_strided_slice %133 {offsets = [0, 8], sizes = [8, 8], strides = [1, 1]} : vector<8x32xf32> to vector<8x8xf32>
    %168 = vector.extract_strided_slice %139 {offsets = [0, 8], sizes = [16, 8], strides = [1, 1]} : vector<16x32xf32> to vector<16x8xf32>
    %169 = vector.extract_strided_slice %144 {offsets = [0, 8], sizes = [16, 8], strides = [1, 1]} : vector<16x32xf32> to vector<16x8xf32>
    %cst_87 = arith.constant dense<0.000000e+00> : vector<8x16xf32>
    %170 = tpu.matmul %167, %168, %cst_87 {dimension_numbers = #tpu.dot_dimension_numbers<[1], [1], [0], [0], [0, 0, 1, 0], [], []>} : vector<8x8xf32>, vector<16x8xf32>, vector<8x16xf32> -> vector<8x16xf32>
    %cst_88 = arith.constant 0.353553385 : f32
    %171 = vector.broadcast %cst_88 : f32 to vector<8x16xf32>
    %172 = arith.mulf %170, %171 : vector<8x16xf32>
    %cst_89 = arith.constant dense<0xFF800000> : vector<8xf32>
    %173 = vector.multi_reduction <maximumf>, %172, %cst_89 [1] : vector<8x16xf32> to vector<8xf32>
    %174 = vector.shape_cast %173 : vector<8xf32> to vector<8x1xf32>
    %175 = vector.broadcast %174 : vector<8x1xf32> to vector<8x16xf32>
    %176 = arith.subf %172, %175 : vector<8x16xf32>
    %177 = math.exp %176 : vector<8x16xf32>
    %cst_90 = arith.constant dense<0.000000e+00> : vector<8xf32>
    %178 = vector.multi_reduction <add>, %177, %cst_90 [1] : vector<8x16xf32> to vector<8xf32>
    %179 = vector.shape_cast %178 : vector<8xf32> to vector<8x1xf32>
    %180 = tpu.reciprocal %179 {approx = true} : vector<8x1xf32> -> vector<8x1xf32>
    %181 = vector.broadcast %180 : vector<8x1xf32> to vector<8x16xf32>
    %182 = arith.mulf %177, %181 : vector<8x16xf32>
    %cst_91 = arith.constant dense<0.000000e+00> : vector<8x8xf32>
    %183 = tpu.matmul %182, %169, %cst_91 {dimension_numbers = #tpu.dot_dimension_numbers<[1], [0], [0], [1], [0, 0, 1, 1], [], []>} : vector<8x16xf32>, vector<16x8xf32>, vector<8x8xf32> -> vector<8x8xf32>
    %c8_92 = arith.constant 8 : index
    %c0_93 = arith.constant 0 : index
    %184 = vector.load %arg17[%c8_92, %c0_93] : memref<32x32xf32, #tpu.memory_space<vmem>>, vector<8x32xf32>
    %cst_94 = arith.constant dense<0.000000e+00> : vector<8x32xf32>
    %185 = tpu.matmul %183, %184, %cst_94 {dimension_numbers = #tpu.dot_dimension_numbers<[1], [0], [0], [1], [0, 0, 1, 1], [], []>} : vector<8x8xf32>, vector<8x32xf32>, vector<8x32xf32> -> vector<8x32xf32>
    %186 = arith.addf %166, %185 : vector<8x32xf32>
    %187 = vector.extract_strided_slice %133 {offsets = [0, 16], sizes = [8, 8], strides = [1, 1]} : vector<8x32xf32> to vector<8x8xf32>
    %188 = vector.extract_strided_slice %139 {offsets = [0, 16], sizes = [16, 8], strides = [1, 1]} : vector<16x32xf32> to vector<16x8xf32>
    %189 = vector.extract_strided_slice %144 {offsets = [0, 16], sizes = [16, 8], strides = [1, 1]} : vector<16x32xf32> to vector<16x8xf32>
    %cst_95 = arith.constant dense<0.000000e+00> : vector<8x16xf32>
    %190 = tpu.matmul %187, %188, %cst_95 {dimension_numbers = #tpu.dot_dimension_numbers<[1], [1], [0], [0], [0, 0, 1, 0], [], []>} : vector<8x8xf32>, vector<16x8xf32>, vector<8x16xf32> -> vector<8x16xf32>
    %cst_96 = arith.constant 0.353553385 : f32
    %191 = vector.broadcast %cst_96 : f32 to vector<8x16xf32>
    %192 = arith.mulf %190, %191 : vector<8x16xf32>
    %cst_97 = arith.constant dense<0xFF800000> : vector<8xf32>
    %193 = vector.multi_reduction <maximumf>, %192, %cst_97 [1] : vector<8x16xf32> to vector<8xf32>
    %194 = vector.shape_cast %193 : vector<8xf32> to vector<8x1xf32>
    %195 = vector.broadcast %194 : vector<8x1xf32> to vector<8x16xf32>
    %196 = arith.subf %192, %195 : vector<8x16xf32>
    %197 = math.exp %196 : vector<8x16xf32>
    %cst_98 = arith.constant dense<0.000000e+00> : vector<8xf32>
    %198 = vector.multi_reduction <add>, %197, %cst_98 [1] : vector<8x16xf32> to vector<8xf32>
    %199 = vector.shape_cast %198 : vector<8xf32> to vector<8x1xf32>
    %200 = tpu.reciprocal %199 {approx = true} : vector<8x1xf32> -> vector<8x1xf32>
    %201 = vector.broadcast %200 : vector<8x1xf32> to vector<8x16xf32>
    %202 = arith.mulf %197, %201 : vector<8x16xf32>
    %cst_99 = arith.constant dense<0.000000e+00> : vector<8x8xf32>
    %203 = tpu.matmul %202, %189, %cst_99 {dimension_numbers = #tpu.dot_dimension_numbers<[1], [0], [0], [1], [0, 0, 1, 1], [], []>} : vector<8x16xf32>, vector<16x8xf32>, vector<8x8xf32> -> vector<8x8xf32>
    %c16_100 = arith.constant 16 : index
    %c0_101 = arith.constant 0 : index
    %204 = vector.load %arg17[%c16_100, %c0_101] : memref<32x32xf32, #tpu.memory_space<vmem>>, vector<8x32xf32>
    %cst_102 = arith.constant dense<0.000000e+00> : vector<8x32xf32>
    %205 = tpu.matmul %203, %204, %cst_102 {dimension_numbers = #tpu.dot_dimension_numbers<[1], [0], [0], [1], [0, 0, 1, 1], [], []>} : vector<8x8xf32>, vector<8x32xf32>, vector<8x32xf32> -> vector<8x32xf32>
    %206 = arith.addf %186, %205 : vector<8x32xf32>
    %207 = vector.extract_strided_slice %133 {offsets = [0, 24], sizes = [8, 8], strides = [1, 1]} : vector<8x32xf32> to vector<8x8xf32>
    %208 = vector.extract_strided_slice %139 {offsets = [0, 24], sizes = [16, 8], strides = [1, 1]} : vector<16x32xf32> to vector<16x8xf32>
    %209 = vector.extract_strided_slice %144 {offsets = [0, 24], sizes = [16, 8], strides = [1, 1]} : vector<16x32xf32> to vector<16x8xf32>
    %cst_103 = arith.constant dense<0.000000e+00> : vector<8x16xf32>
    %210 = tpu.matmul %207, %208, %cst_103 {dimension_numbers = #tpu.dot_dimension_numbers<[1], [1], [0], [0], [0, 0, 1, 0], [], []>} : vector<8x8xf32>, vector<16x8xf32>, vector<8x16xf32> -> vector<8x16xf32>
    %cst_104 = arith.constant 0.353553385 : f32
    %211 = vector.broadcast %cst_104 : f32 to vector<8x16xf32>
    %212 = arith.mulf %210, %211 : vector<8x16xf32>
    %cst_105 = arith.constant dense<0xFF800000> : vector<8xf32>
    %213 = vector.multi_reduction <maximumf>, %212, %cst_105 [1] : vector<8x16xf32> to vector<8xf32>
    %214 = vector.shape_cast %213 : vector<8xf32> to vector<8x1xf32>
    %215 = vector.broadcast %214 : vector<8x1xf32> to vector<8x16xf32>
    %216 = arith.subf %212, %215 : vector<8x16xf32>
    %217 = math.exp %216 : vector<8x16xf32>
    %cst_106 = arith.constant dense<0.000000e+00> : vector<8xf32>
    %218 = vector.multi_reduction <add>, %217, %cst_106 [1] : vector<8x16xf32> to vector<8xf32>
    %219 = vector.shape_cast %218 : vector<8xf32> to vector<8x1xf32>
    %220 = tpu.reciprocal %219 {approx = true} : vector<8x1xf32> -> vector<8x1xf32>
    %221 = vector.broadcast %220 : vector<8x1xf32> to vector<8x16xf32>
    %222 = arith.mulf %217, %221 : vector<8x16xf32>
    %cst_107 = arith.constant dense<0.000000e+00> : vector<8x8xf32>
    %223 = tpu.matmul %222, %209, %cst_107 {dimension_numbers = #tpu.dot_dimension_numbers<[1], [0], [0], [1], [0, 0, 1, 1], [], []>} : vector<8x16xf32>, vector<16x8xf32>, vector<8x8xf32> -> vector<8x8xf32>
    %c24_108 = arith.constant 24 : index
    %c0_109 = arith.constant 0 : index
    %224 = vector.load %arg17[%c24_108, %c0_109] : memref<32x32xf32, #tpu.memory_space<vmem>>, vector<8x32xf32>
    %cst_110 = arith.constant dense<0.000000e+00> : vector<8x32xf32>
    %225 = tpu.matmul %223, %224, %cst_110 {dimension_numbers = #tpu.dot_dimension_numbers<[1], [0], [0], [1], [0, 0, 1, 1], [], []>} : vector<8x8xf32>, vector<8x32xf32>, vector<8x32xf32> -> vector<8x32xf32>
    %226 = arith.addf %206, %225 : vector<8x32xf32>
    %227 = vector.broadcast %145 : vector<1x32xf32> to vector<8x32xf32>
    %228 = arith.addf %226, %227 : vector<8x32xf32>
    %229 = arith.addf %127, %228 : vector<8x32xf32>
    %c1 = arith.constant 1 : index
    %c0_111 = arith.constant 0 : index
    %230 = vector.load %arg23[%c1, %c0_111] : memref<3x32xf32, #tpu.memory_space<vmem>>, vector<1x32xf32>
    %c1_112 = arith.constant 1 : index
    %c0_113 = arith.constant 0 : index
    %231 = vector.load %arg24[%c1_112, %c0_113] : memref<3x32xf32, #tpu.memory_space<vmem>>, vector<1x32xf32>
    %cst_114 = arith.constant dense<0.000000e+00> : vector<8xf32>
    %232 = vector.multi_reduction <add>, %229, %cst_114 [1] : vector<8x32xf32> to vector<8xf32>
    %233 = vector.shape_cast %232 : vector<8xf32> to vector<8x1xf32>
    %cst_115 = arith.constant 3.200000e+01 : f32
    %234 = vector.broadcast %cst_115 : f32 to vector<8x1xf32>
    %235 = arith.divf %233, %234 : vector<8x1xf32>
    %236 = vector.broadcast %235 : vector<8x1xf32> to vector<8x32xf32>
    %237 = arith.subf %229, %236 : vector<8x32xf32>
    %238 = arith.mulf %237, %237 : vector<8x32xf32>
    %cst_116 = arith.constant dense<0.000000e+00> : vector<8xf32>
    %239 = vector.multi_reduction <add>, %238, %cst_116 [1] : vector<8x32xf32> to vector<8xf32>
    %240 = vector.shape_cast %239 : vector<8xf32> to vector<8x1xf32>
    %cst_117 = arith.constant 3.200000e+01 : f32
    %241 = vector.broadcast %cst_117 : f32 to vector<8x1xf32>
    %242 = arith.divf %240, %241 : vector<8x1xf32>
    %cst_118 = arith.constant 9.99999974E-6 : f32
    %243 = vector.broadcast %cst_118 : f32 to vector<8x1xf32>
    %244 = arith.addf %242, %243 : vector<8x1xf32>
    %245 = math.rsqrt %244 : vector<8x1xf32>
    %246 = vector.broadcast %245 : vector<8x1xf32> to vector<8x32xf32>
    %247 = arith.mulf %237, %246 : vector<8x32xf32>
    %248 = vector.broadcast %230 : vector<1x32xf32> to vector<8x32xf32>
    %249 = arith.mulf %247, %248 : vector<8x32xf32>
    %250 = vector.broadcast %231 : vector<1x32xf32> to vector<8x32xf32>
    %251 = arith.addf %249, %250 : vector<8x32xf32>
    %c0_119 = arith.constant 0 : index
    %c0_120 = arith.constant 0 : index
    %252 = vector.load %arg19[%c0_119, %c0_120] : memref<32x64xf32, #tpu.memory_space<vmem>>, vector<32x64xf32>
    %cst_121 = arith.constant dense<0.000000e+00> : vector<8x64xf32>
    %253 = tpu.matmul %251, %252, %cst_121 {dimension_numbers = #tpu.dot_dimension_numbers<[1], [0], [0], [1], [0, 0, 1, 1], [], []>} : vector<8x32xf32>, vector<32x64xf32>, vector<8x64xf32> -> vector<8x64xf32>
    %c0_122 = arith.constant 0 : index
    %c0_123 = arith.constant 0 : index
    %254 = vector.load %arg20[%c0_122, %c0_123] : memref<1x64xf32, #tpu.memory_space<vmem>>, vector<1x64xf32>
    %255 = vector.broadcast %254 : vector<1x64xf32> to vector<8x64xf32>
    %256 = arith.addf %253, %255 : vector<8x64xf32>
    %cst_124 = arith.constant 0.000000e+00 : f32
    %257 = vector.broadcast %cst_124 : f32 to vector<8x64xf32>
    %258 = arith.maximumf %256, %257 : vector<8x64xf32>
    %c0_125 = arith.constant 0 : index
    %c0_126 = arith.constant 0 : index
    %259 = vector.load %arg21[%c0_125, %c0_126] : memref<64x32xf32, #tpu.memory_space<vmem>>, vector<64x32xf32>
    %cst_127 = arith.constant dense<0.000000e+00> : vector<8x32xf32>
    %260 = tpu.matmul %258, %259, %cst_127 {dimension_numbers = #tpu.dot_dimension_numbers<[1], [0], [0], [1], [0, 0, 1, 1], [], []>} : vector<8x64xf32>, vector<64x32xf32>, vector<8x32xf32> -> vector<8x32xf32>
    %c0_128 = arith.constant 0 : index
    %c0_129 = arith.constant 0 : index
    %261 = vector.load %arg22[%c0_128, %c0_129] : memref<1x32xf32, #tpu.memory_space<vmem>>, vector<1x32xf32>
    %262 = vector.broadcast %261 : vector<1x32xf32> to vector<8x32xf32>
    %263 = arith.addf %260, %262 : vector<8x32xf32>
    %264 = arith.addf %251, %263 : vector<8x32xf32>
    %c2 = arith.constant 2 : index
    %c0_130 = arith.constant 0 : index
    %265 = vector.load %arg23[%c2, %c0_130] : memref<3x32xf32, #tpu.memory_space<vmem>>, vector<1x32xf32>
    %c2_131 = arith.constant 2 : index
    %c0_132 = arith.constant 0 : index
    %266 = vector.load %arg24[%c2_131, %c0_132] : memref<3x32xf32, #tpu.memory_space<vmem>>, vector<1x32xf32>
    %cst_133 = arith.constant dense<0.000000e+00> : vector<8xf32>
    %267 = vector.multi_reduction <add>, %264, %cst_133 [1] : vector<8x32xf32> to vector<8xf32>
    %268 = vector.shape_cast %267 : vector<8xf32> to vector<8x1xf32>
    %cst_134 = arith.constant 3.200000e+01 : f32
    %269 = vector.broadcast %cst_134 : f32 to vector<8x1xf32>
    %270 = arith.divf %268, %269 : vector<8x1xf32>
    %271 = vector.broadcast %270 : vector<8x1xf32> to vector<8x32xf32>
    %272 = arith.subf %264, %271 : vector<8x32xf32>
    %273 = arith.mulf %272, %272 : vector<8x32xf32>
    %cst_135 = arith.constant dense<0.000000e+00> : vector<8xf32>
    %274 = vector.multi_reduction <add>, %273, %cst_135 [1] : vector<8x32xf32> to vector<8xf32>
    %275 = vector.shape_cast %274 : vector<8xf32> to vector<8x1xf32>
    %cst_136 = arith.constant 3.200000e+01 : f32
    %276 = vector.broadcast %cst_136 : f32 to vector<8x1xf32>
    %277 = arith.divf %275, %276 : vector<8x1xf32>
    %cst_137 = arith.constant 9.99999974E-6 : f32
    %278 = vector.broadcast %cst_137 : f32 to vector<8x1xf32>
    %279 = arith.addf %277, %278 : vector<8x1xf32>
    %280 = math.rsqrt %279 : vector<8x1xf32>
    %281 = vector.broadcast %280 : vector<8x1xf32> to vector<8x32xf32>
    %282 = arith.mulf %272, %281 : vector<8x32xf32>
    %283 = vector.broadcast %265 : vector<1x32xf32> to vector<8x32xf32>
    %284 = arith.mulf %282, %283 : vector<8x32xf32>
    %285 = vector.broadcast %266 : vector<1x32xf32> to vector<8x32xf32>
    %286 = arith.addf %284, %285 : vector<8x32xf32>
    %c0_138 = arith.constant 0 : index
    %c0_139 = arith.constant 0 : index
    %c0_140 = arith.constant 0 : index
    %287 = vector.load %arg25[%c0_138, %c0_139, %c0_140] : memref<1x8x32xf32, #tpu.memory_space<vmem>>, vector<1x8x32xf32>
    %288 = vector.shape_cast %287 : vector<1x8x32xf32> to vector<8x32xf32>
    %289 = vector.shape_cast %286 : vector<8x32xf32> to vector<1x8x32xf32>
    tpu.vector_store %arg25[%c0_138, %c0_139, %c0_140], %289 {strides = array<i32>} : memref<1x8x32xf32, #tpu.memory_space<vmem>>, vector<1x8x32xf32>,
    return
  }
  func.func @transform_0(%arg0: i32) -> (i32, i32, i32) {
    %c0_i32 = arith.constant 0 : i32
    %c0_i32_0 = arith.constant 0 : i32
    %c0_i32_1 = arith.constant 0 : i32
    return %arg0, %c0_i32, %c0_i32_0 : i32, i32, i32
  }
  func.func @transform_1(%arg0: i32) -> (i32, i32, i32) {
    %c0_i32 = arith.constant 0 : i32
    %c0_i32_0 = arith.constant 0 : i32
    %c0_i32_1 = arith.constant 0 : i32
    return %arg0, %c0_i32, %c0_i32_0 : i32, i32, i32
  }
  func.func @transform_2(%arg0: i32) -> (i32, i32, i32) {
    %c0_i32 = arith.constant 0 : i32
    %c0_i32_0 = arith.constant 0 : i32
    %c0_i32_1 = arith.constant 0 : i32
    return %arg0, %c0_i32, %c0_i32_0 : i32, i32, i32
  }
  func.func @transform_3(%arg0: i32) -> (i32, i32, i32) {
    %c0_i32 = arith.constant 0 : i32
    %c0_i32_0 = arith.constant 0 : i32
    %c0_i32_1 = arith.constant 0 : i32
    return %arg0, %c0_i32, %c0_i32_0 : i32, i32, i32
  }
  func.func @transform_4(%arg0: i32) -> (i32, i32) {
    %c0_i32 = arith.constant 0 : i32
    %c0_i32_0 = arith.constant 0 : i32
    %c0_i32_1 = arith.constant 0 : i32
    return %c0_i32, %c0_i32_0 : i32, i32
  }
  func.func @transform_5(%arg0: i32) -> (i32, i32) {
    %c0_i32 = arith.constant 0 : i32
    %c0_i32_0 = arith.constant 0 : i32
    %c0_i32_1 = arith.constant 0 : i32
    return %c0_i32, %c0_i32_0 : i32, i32
  }
  func.func @transform_6(%arg0: i32) -> (i32, i32) {
    %c0_i32 = arith.constant 0 : i32
    %c0_i32_0 = arith.constant 0 : i32
    %c0_i32_1 = arith.constant 0 : i32
    return %c0_i32, %c0_i32_0 : i32, i32
  }
  func.func @transform_7(%arg0: i32) -> (i32, i32) {
    %c0_i32 = arith.constant 0 : i32
    %c0_i32_0 = arith.constant 0 : i32
    %c0_i32_1 = arith.constant 0 : i32
    return %c0_i32, %c0_i32_0 : i32, i32
  }
  func.func @transform_8(%arg0: i32) -> (i32, i32) {
    %c0_i32 = arith.constant 0 : i32
    %c0_i32_0 = arith.constant 0 : i32
    %c0_i32_1 = arith.constant 0 : i32
    return %c0_i32, %c0_i32_0 : i32, i32
  }
  func.func @transform_9(%arg0: i32) -> (i32, i32) {
    %c0_i32 = arith.constant 0 : i32
    %c0_i32_0 = arith.constant 0 : i32
    %c0_i32_1 = arith.constant 0 : i32
    return %c0_i32, %c0_i32_0 : i32, i32
  }
  func.func @transform_10(%arg0: i32) -> (i32, i32) {
    %c0_i32 = arith.constant 0 : i32
    %c0_i32_0 = arith.constant 0 : i32
    %c0_i32_1 = arith.constant 0 : i32
    return %c0_i32, %c0_i32_0 : i32, i32
  }
  func.func @transform_11(%arg0: i32) -> (i32, i32) {
    %c0_i32 = arith.constant 0 : i32
    %c0_i32_0 = arith.constant 0 : i32
    %c0_i32_1 = arith.constant 0 : i32
    return %c0_i32, %c0_i32_0 : i32, i32
  }
  func.func @transform_12(%arg0: i32) -> (i32, i32) {
    %c0_i32 = arith.constant 0 : i32
    %c0_i32_0 = arith.constant 0 : i32
    %c0_i32_1 = arith.constant 0 : i32
    return %c0_i32, %c0_i32_0 : i32, i32
  }
  func.func @transform_13(%arg0: i32) -> (i32, i32) {
    %c0_i32 = arith.constant 0 : i32
    %c0_i32_0 = arith.constant 0 : i32
    %c0_i32_1 = arith.constant 0 : i32
    return %c0_i32, %c0_i32_0 : i32, i32
  }
  func.func @transform_14(%arg0: i32) -> (i32, i32) {
    %c0_i32 = arith.constant 0 : i32
    %c0_i32_0 = arith.constant 0 : i32
    %c0_i32_1 = arith.constant 0 : i32
    return %c0_i32, %c0_i32_0 : i32, i32
  }
  func.func @transform_15(%arg0: i32) -> (i32, i32) {
    %c0_i32 = arith.constant 0 : i32
    %c0_i32_0 = arith.constant 0 : i32
    %c0_i32_1 = arith.constant 0 : i32
    return %c0_i32, %c0_i32_0 : i32, i32
  }
  func.func @transform_16(%arg0: i32) -> (i32, i32) {
    %c0_i32 = arith.constant 0 : i32
    %c0_i32_0 = arith.constant 0 : i32
    %c0_i32_1 = arith.constant 0 : i32
    return %c0_i32, %c0_i32_0 : i32, i32
  }
  func.func @transform_17(%arg0: i32) -> (i32, i32) {
    %c0_i32 = arith.constant 0 : i32
    %c0_i32_0 = arith.constant 0 : i32
    %c0_i32_1 = arith.constant 0 : i32
    return %c0_i32, %c0_i32_0 : i32, i32
  }
  func.func @transform_18(%arg0: i32) -> (i32, i32) {
    %c0_i32 = arith.constant 0 : i32
    %c0_i32_0 = arith.constant 0 : i32
    %c0_i32_1 = arith.constant 0 : i32
    return %c0_i32, %c0_i32_0 : i32, i32
  }
  func.func @transform_19(%arg0: i32) -> (i32, i32) {
    %c0_i32 = arith.constant 0 : i32
    %c0_i32_0 = arith.constant 0 : i32
    %c0_i32_1 = arith.constant 0 : i32
    return %c0_i32, %c0_i32_0 : i32, i32
  }
  func.func @transform_20(%arg0: i32) -> (i32, i32) {
    %c0_i32 = arith.constant 0 : i32
    %c0_i32_0 = arith.constant 0 : i32
    %c0_i32_1 = arith.constant 0 : i32
    return %c0_i32, %c0_i32_0 : i32, i32
  }
  func.func @transform_21(%arg0: i32) -> (i32, i32) {
    %c0_i32 = arith.constant 0 : i32
    %c0_i32_0 = arith.constant 0 : i32
    %c0_i32_1 = arith.constant 0 : i32
    return %c0_i32, %c0_i32_0 : i32, i32
  }
  func.func @transform_22(%arg0: i32) -> (i32, i32) {
    %c0_i32 = arith.constant 0 : i32
    %c0_i32_0 = arith.constant 0 : i32
    %c0_i32_1 = arith.constant 0 : i32
    return %c0_i32, %c0_i32_0 : i32, i32
  }
  func.func @transform_23(%arg0: i32) -> (i32, i32) {
    %c0_i32 = arith.constant 0 : i32
    %c0_i32_0 = arith.constant 0 : i32
    %c0_i32_1 = arith.constant 0 : i32
    return %c0_i32, %c0_i32_0 : i32, i32
  }
  func.func @transform_24(%arg0: i32) -> (i32, i32, i32) {
    %c0_i32 = arith.constant 0 : i32
    %c0_i32_0 = arith.constant 0 : i32
    %c0_i32_1 = arith.constant 0 : i32
    return %arg0, %c0_i32, %c0_i32_0 : i32, i32, i32
  }
}

</mosaic_0001>

<bundles_post_ra>
// kernel: tpu_custom_call.1
= control target key start
LH: loop header
LB: loop body
LE: loop exit
PB: predicated region body
PF: predicated region fallthrough
CT: control target
= control target key end

     0   :  { %s6124_s0 = inlined_call_operand.hbm [shape: f32[2,8,32], index: 0, kind: input, shape index: {}]   ;;  %s6125_s1 = inlined_call_operand.hbm [shape: f32[2,8,32], index: 1, kind: input, shape index: {}]   ;;  %s6126_s2 = inlined_call_operand.vmem [shape: f32[2,16,32], index: 2, kind: input, shape index: {}]   ;;  %s6127_s3 = inlined_call_operand.vmem [shape: f32[2,16,32], index: 3, kind: input, shape index: {}]   ;;  %s6128_s4 = inlined_call_operand.vmem [shape: f32[32,64], index: 4, kind: input, shape index: {}]   ;;  %s6129_s5 = inlined_call_operand.hbm [shape: f32[1,64], index: 5, kind: input, shape index: {}]   ;;  %s6130_s6 = inlined_call_operand.hbm [shape: f32[32,32], index: 6, kind: input, shape index: {}]   ;;  %s6131_s7 = inlined_call_operand.hbm [shape: f32[1,32], index: 7, kind: input, shape index: {}]   ;;  %s6132_s8 = inlined_call_operand.hbm [shape: f32[32,32], index: 8, kind: input, shape index: {}]   ;;  %s6133_s9 = inlined_call_operand.hbm [shape: f32[1,32], index: 9, kind: input, shape index: {}]   ;;  %s6134_s10 = inlined_call_operand.vmem [shape: f32[32,32], index: 10, kind: input, shape index: {}]   ;;  %s6135_s11 = inlined_call_operand.hbm [shape: f32[1,32], index: 11, kind: input, shape index: {}]   ;;  %s6136_s12 = inlined_call_operand.hbm [shape: f32[32,32], index: 12, kind: input, shape index: {}]   ;;  %s6137_s13 = inlined_call_operand.hbm [shape: f32[1,32], index: 13, kind: input, shape index: {}]   ;;  %s6138_s14 = inlined_call_operand.hbm [shape: f32[32,32], index: 14, kind: input, shape index: {}]   ;;  %s6139_s15 = inlined_call_operand.hbm [shape: f32[1,32], index: 15, kind: input, shape index: {}]   ;;  %s6140_s16 = inlined_call_operand.hbm [shape: f32[32,32], index: 16, kind: input, shape index: {}]   ;;  %s6141_s17 = inlined_call_operand.hbm [shape: f32[1,32], index: 17, kind: input, shape index: {}]   ;;  %s6142_s18 = inlined_call_operand.vmem [shape: f32[32,64], index: 18, kind: input, shape index: {}]   ;;  %s6143_s19 = inlined_call_operand.vmem [shape: f32[1,64], index: 19, kind: input, shape index: {}]   ;;  %s6144_s20 = inlined_call_operand.vmem [shape: f32[64,32], index: 20, kind: input, shape index: {}]   ;;  %s6145_s21 = inlined_call_operand.vmem [shape: f32[1,32], index: 21, kind: input, shape index: {}]   ;;  %s6146_s22 = inlined_call_operand.vmem [shape: f32[3,32], index: 22, kind: input, shape index: {}]   ;;  %s6147_s23 = inlined_call_operand.vmem [shape: f32[3,32], index: 23, kind: input, shape index: {}]   ;;  %s6148_s24 = inlined_call_operand.hbm [shape: f32[2,8,32], index: 24, kind: output, shape index: {}]  }
   0x1   :  { %6174 = sst [smem:[#allocation37_spill]] %s6124_s0 }
   0x2   :  { %6175 = sst [smem:[#allocation38_spill]] %s6125_s1 }
   0x3   :  { %6176 = sst [smem:[#allocation39_spill]] %s6126_s2 }
   0x4   :  { %6177 = sst [smem:[#allocation40_spill]] %s6127_s3 }
   0x5   :  { %6178 = sst [smem:[#allocation41_spill]] %s6128_s4 }
   0x6   :  { %6179 = sst [smem:[#allocation42_spill]] %s6129_s5 }
   0x7   :  { %6180 = sst [smem:[#allocation43_spill]] %s6130_s6 }
   0x8   :  { %6181 = sst [smem:[#allocation44_spill]] %s6131_s7 }
   0x9   :  { %6182 = sst [smem:[#allocation45_spill]] %s6132_s8 }
   0xa   :  { %6183 = sst [smem:[#allocation46_spill]] %s6133_s9 }
   0xb   :  { %6184 = sst [smem:[#allocation47_spill]] %s6134_s10 }
   0xc   :  { %6185 = sst [smem:[#allocation48_spill]] %s6135_s11 }
   0xd   :  { %6186 = sst [smem:[#allocation49_spill]] %s6136_s12 }
   0xe   :  { %6187 = sst [smem:[#allocation50_spill]] %s6137_s13 }
   0xf   :  { %6188 = sst [smem:[#allocation51_spill]] %s6138_s14 }
  0x10   :  { %6189 = sst [smem:[#allocation52_spill]] %s6139_s15 }
  0x11   :  { %6190 = sst [smem:[#allocation53_spill]] %s6142_s18 }
  0x12   :  { %6191 = sst [smem:[#allocation54_spill]] %s6143_s19 }
  0x13   :  { %6192 = sst [smem:[#allocation55_spill]] %s6144_s20 }
  0x14   :  { %6193 = sst [smem:[#allocation56_spill]] %s6145_s21 }
  0x15   :  { %6194 = sst [smem:[#allocation57_spill]] %s6146_s22 }
  0x16   :  { %6195 = sst [smem:[#allocation58_spill]] %s6147_s23 }
  0x17   :  { %6196 = sst [smem:[#allocation59_spill]] %s6148_s24 }
  0x18   :  { %29 = vsyncpa [#allocation3], 0 }
  0x19   :  { %31 = vsyncpa [#allocation3 + $0x1], 0 }
  0x1a   :  { %32 = vsyncpa [#allocation6], 0 }
  0x1b   :  { %34 = vsyncpa [#allocation6 + $0x1], 0 }
  0x1c   :  { %35 = vsyncpa [#allocation9], 0 }
  0x1d   :  { %36 = vsyncpa [#allocation12], 0 }
  0x1e   :  { %37 = vsyncpa [#allocation15], 0 }
  0x1f   :  { %38 = vsyncpa [#allocation18], 0 }
  0x20   :  { %39 = vsyncpa [#allocation21], 0 }
  0x21   :  { %40 = vsyncpa [#allocation24], 0 }
  0x22   :  { %41 = vsyncpa [#allocation4], 0 }
  0x23   :  { %43 = vsyncpa [#allocation4 + $0x1], 0  ;;  %s5299_s5 = smov 0   ;;  %s5301_s26 = smov 0  }
  0x24   :  { %s5303_s27 = smov 0   ;;  %s5305_s28 = smov 0  }
  0x25 LB: > { %s5147_s6 = smov [#allocation7]   ;;  %s5320_s29 = sadd.s32 4294967295, %s5145_s28   ;;  %s5145_s28 = sphi %s5305_s28, %s6256_s28   ;;  %s5141_s27 = sphi %s5303_s27, %s6255_s27   ;;  %s5137_s26 = sphi %s5301_s26, %s6254_s26   ;;  %s5133_s5 = sphi %s5299_s5, %s6253_s5  }
  0x26   : > { %s620_s2 = sshll.u32 %s5147_s6, 4  ;;  %p3897_p0 = scmp.ge.s32.totalorder %s5145_s28, 1  ;;  %s5325_s2 = int_to_ptr.vmem [resolvable:$true] %s620_s2 }
  0x27   : > { %p6165_p1 = scmp.eq.s32.totalorder %s5320_s29, 0  ;;  %p604_p2 = scmp.lt.s32.totalorder %s5145_s28, 3 }
  0x28   : > { %s5148_s7 = smov [#allocation8]   ;;  %s5149_s25 = smov [#allocation11]  }
  0x29   : > { %p5327_p3 = pnand %p3897_p0, %p604_p2  ;;  %s630_s30 = sshll.u32 %s5148_s7, 4  ;;  %s5334_s30 = int_to_ptr.vmem [resolvable:$true] %s630_s30 }
  0x2a   : > { %s654_s8 = sshll.u32 %s5149_s25, 4  ;;  %s6200_s6 = sld [smem:[#allocation42_spill]]  ;;  %s5342_s8 = int_to_ptr.vmem [resolvable:$true] %s654_s8 }
  0x2b   : > { %s6197_s0 = scalar_select %p5327_p3, 1, 0 }
  0x2c   : > { %p4453_p5 = pneg %p5327_p3 }
  0x2d   : > { %6198 = sst [smem:[#allocation36_spill]] %s6197_s0 }
  0x2e   : > { %p5338_p6 = pnand %p4453_p5, %p6165_p1 }
  0x30   : > { %s4651_s24 = scalar_lea.hbm %s6200_s6, 16  ;;  %p5352_p8 = pneg %p5338_p6 }
  0x31   : > { %p4652_p7 = scmp.ne.s32.totalorder %s6200_s6, %s4651_s24  ;;  %p4658_p11 = scmp.lt.u32.totalorder %s4651_s24, %s6200_s6 }
  0x33   : > { %p4654_p9 = pnand %p5352_p8, %p4652_p7 }
  0x35   : > { %p4655_p10 = pneg %p4654_p9 }
  0x37   : > { %p4660_p12 = pnand %p4658_p11, %p4655_p10 }
  0x39   : > { %4663 = shalt.err (!%p4660_p12)
}
  0x3a   : > { %s4664_s19 = scalar_lea.vmem %s5325_s2, 16  ;;  %s4671_s21 = scalar_lea.vmem %s5325_s2, 32 }
  0x3b   : > { %p4665_p13 = scmp.ne.s32.totalorder %s5325_s2, %s4664_s19  ;;  %p4672_p5 = scmp.lt.s32.totalorder %s5325_s2, %s5325_s2 }
  0x3c   : > { %p4673_p7 = scmp.lt.s32.totalorder %s4671_s21, %s4664_s19 }
  0x3d   : > { %p4667_p0 = pnand %p4665_p13, %p5352_p8 }
  0x3e   : > { %p4674_p9 = por %p4673_p7, %p4672_p5 }
  0x3f   : > { %p4668_p2 = pneg %p4667_p0 }
  0x41   : > { %p4675_p4 = pnand %p4674_p9, %p4668_p2 }
  0x43   : > { %4678 = shalt.err (!%p4675_p4)
}
  0x44   : > { %4456 = dma.hbm_to_vmem [thread:$0]  (!%p5338_p6), %s6200_s6, 16, %s5325_s2, [#allocation6]  }
  0x45   : > { %s6202_s25 = sld [smem:[#allocation43_spill]] }
  0x4b   : > { %s4679_s18 = scalar_lea.hbm %s6202_s25, 512 }
  0x4c   : > { %p4680_p10 = scmp.ne.s32.totalorder %s6202_s25, %s4679_s18  ;;  %p4686_p4 = scmp.lt.u32.totalorder %s4679_s18, %s6202_s25 }
  0x4e   : > { %p4682_p11 = pnand %p4680_p10, %p5352_p8 }
  0x50   : > { %p4683_p12 = pneg %p4682_p11 }
  0x52   : > { %p4688_p13 = pnand %p4686_p4, %p4683_p12 }
  0x54   : > { %4691 = shalt.err (!%p4688_p13)
}
  0x55   : > { %s4692_s2 = scalar_lea.vmem %s5334_s30, 512  ;;  %p4700_p7 = scmp.lt.s32.totalorder %s5334_s30, %s5334_s30 }
  0x56   : > { %p4693_p0 = scmp.ne.s32.totalorder %s5334_s30, %s4692_s2  ;;  %p4701_p9 = scmp.lt.s32.totalorder %s4692_s2, %s4692_s2 }
  0x58   : > { %p4695_p2 = pnand %p4693_p0, %p5352_p8  ;;  %p4702_p10 = por %p4701_p9, %p4700_p7 }
  0x5a   : > { %p4696_p5 = pneg %p4695_p2 }
  0x5c   : > { %p4703_p11 = pnand %p4702_p10, %p4696_p5 }
  0x5e   : > { %4706 = shalt.err (!%p4703_p11)
}
  0x5f   : > { %s6167_s22 = smov 128   ;;  %s5151_s18 = smov 8  }
  0x60   : > { %4459 = dma.hbm_to_vmem [thread:$0]  (!%p5338_p6), %s6202_s25, 512, %s5334_s30, [#allocation9], %s6167_s22, %s6167_s22, %s5151_s18  }
  0x61   : > { %s6203_s1 = sld [smem:[#allocation45_spill]] }
  0x67   : > { %s4707_s19 = scalar_lea.hbm %s6203_s1, 512 }
  0x68   : > { %p4708_p12 = scmp.ne.s32.totalorder %s6203_s1, %s4707_s19  ;;  %p4714_p0 = scmp.lt.u32.totalorder %s4707_s19, %s6203_s1 }
  0x6a   : > { %p4710_p4 = pnand %p4708_p12, %p5352_p8 }
  0x6c   : > { %p4711_p13 = pneg %p4710_p4 }
  0x6e   : > { %p4716_p2 = pnand %p4714_p0, %p4711_p13 }
  0x70   : > { %4719 = shalt.err (!%p4716_p2)
}
  0x71   : > { %s4720_s30 = scalar_lea.vmem %s5342_s8, 512  ;;  %p4728_p10 = scmp.lt.s32.totalorder %s5342_s8, %s5342_s8 }
  0x72   : > { %p4721_p5 = scmp.ne.s32.totalorder %s5342_s8, %s4720_s30  ;;  %p4729_p11 = scmp.lt.s32.totalorder %s4720_s30, %s4720_s30 }
  0x74   : > { %p4723_p7 = pnand %p4721_p5, %p5352_p8  ;;  %p4730_p12 = por %p4729_p11, %p4728_p10 }
  0x76   : > { %p4724_p9 = pneg %p4723_p7 }
  0x78   : > { %p4731_p4 = pnand %p4730_p12, %p4724_p9 }
  0x7a   : > { %4734 = shalt.err (!%p4731_p4)
}
  0x7b   : > { %4465 = dma.hbm_to_vmem [thread:$0]  (!%p5338_p6), %s6203_s1, 512, %s5342_s8, [#allocation12], %s6167_s22, %s6167_s22, %s5151_s18  }
  0x7c   : > { %s5152_s23 = smov [#allocation14]   ;;  %s5153_s24 = smov [#allocation17]  }
  0x7d   : > { %s682_s20 = sshll.u32 %s5152_s23, 4  ;;  %s706_s4 = sshll.u32 %s5153_s24, 4  ;;  %s683_s20 = int_to_ptr.vmem [resolvable:$true] %s682_s20  ;;  %s707_s4 = int_to_ptr.vmem [resolvable:$true] %s706_s4 }
  0x7e   : > { %s6204_s11 = sld [smem:[#allocation48_spill]] }
  0x84   : > { %s4735_s2 = scalar_lea.hbm %s6204_s11, 16 }
  0x85   : > { %p4736_p13 = scmp.ne.s32.totalorder %s6204_s11, %s4735_s2  ;;  %p4742_p5 = scmp.lt.u32.totalorder %s4735_s2, %s6204_s11 }
  0x87   : > { %p4738_p0 = pnand %p4736_p13, %p5352_p8 }
  0x89   : > { %p4739_p2 = pneg %p4738_p0 }
  0x8b   : > { %p4744_p7 = pnand %p4742_p5, %p4739_p2 }
  0x8d   : > { %4747 = shalt.err (!%p4744_p7)
}
  0x8e   : > { %s4748_s8 = scalar_lea.vmem %s683_s20, 16  ;;  %s4755_s6 = scalar_lea.vmem %s683_s20, 32 }
  0x8f   : > { %p4749_p9 = scmp.ne.s32.totalorder %s683_s20, %s4748_s8  ;;  %p4756_p12 = scmp.lt.s32.totalorder %s683_s20, %s683_s20 }
  0x90   : > { %p4757_p4 = scmp.lt.s32.totalorder %s4755_s6, %s4748_s8 }
  0x91   : > { %p4751_p10 = pnand %p4749_p9, %p5352_p8 }
  0x92   : > { %p4758_p1 = por %p4757_p4, %p4756_p12 }
  0x93   : > { %p4752_p11 = pneg %p4751_p10 }
  0x95   : > { %p4759_p3 = pnand %p4758_p1, %p4752_p11 }
  0x97   : > { %4762 = shalt.err (!%p4759_p3)
}
  0x98   : > { %4471 = dma.hbm_to_vmem [thread:$0]  (!%p5338_p6), %s6204_s11, 16, %s683_s20, [#allocation15]  }
  0x99   : > { %s6205_s13 = sld [smem:[#allocation50_spill]] }
  0x9f   : > { %s4763_s19 = scalar_lea.hbm %s6205_s13, 16 }
  0xa0   : > { %p4764_p13 = scmp.ne.s32.totalorder %s6205_s13, %s4763_s19  ;;  %p4770_p3 = scmp.lt.u32.totalorder %s4763_s19, %s6205_s13 }
  0xa2   : > { %p4766_p0 = pnand %p4764_p13, %p5352_p8 }
  0xa4   : > { %p4767_p1 = pneg %p4766_p0 }
  0xa6   : > { %p4772_p2 = pnand %p4770_p3, %p4767_p1 }
  0xa8   : > { %4775 = shalt.err (!%p4772_p2)
}
  0xa9   : > { %s4776_s8 = scalar_lea.vmem %s707_s4, 16  ;;  %s4783_s20 = scalar_lea.vmem %s707_s4, 32 }
  0xaa   : > { %p4777_p5 = scmp.ne.s32.totalorder %s707_s4, %s4776_s8  ;;  %p4784_p10 = scmp.lt.s32.totalorder %s707_s4, %s707_s4 }
  0xab   : > { %p4785_p11 = scmp.lt.s32.totalorder %s4783_s20, %s4776_s8 }
  0xac   : > { %p4779_p7 = pnand %p4777_p5, %p5352_p8 }
  0xad   : > { %p4786_p12 = por %p4785_p11, %p4784_p10 }
  0xae   : > { %p4780_p9 = pneg %p4779_p7 }
  0xb0   : > { %p4787_p4 = pnand %p4786_p12, %p4780_p9 }
  0xb2   : > { %4790 = shalt.err (!%p4787_p4)
}
  0xb3   : > { %4477 = dma.hbm_to_vmem [thread:$0]  (!%p5338_p6), %s6205_s13, 16, %s707_s4, [#allocation18]  }
  0xb4   : > { %s5154_s23 = smov [#allocation20]   ;;  %s5155_s24 = smov [#allocation10]  }
  0xb5   : > { %s730_s0 = sshll.u32 %s5154_s23, 4  ;;  %s644_s19 = sshll.u32 %s5155_s24, 4  ;;  %s731_s0 = int_to_ptr.vmem [resolvable:$true] %s730_s0  ;;  %s645_s19 = int_to_ptr.vmem [resolvable:$true] %s644_s19 }
  0xb6   : > { %s6206_s15 = sld [smem:[#allocation52_spill]] }
  0xbc   : > { %s4791_s30 = scalar_lea.hbm %s6206_s15, 16 }
  0xbd   : > { %p4792_p13 = scmp.ne.s32.totalorder %s6206_s15, %s4791_s30  ;;  %p4798_p3 = scmp.lt.u32.totalorder %s4791_s30, %s6206_s15 }
  0xbf   : > { %p4794_p0 = pnand %p4792_p13, %p5352_p8 }
  0xc1   : > { %p4795_p1 = pneg %p4794_p0 }
  0xc3   : > { %p4800_p2 = pnand %p4798_p3, %p4795_p1 }
  0xc5   : > { %4803 = shalt.err (!%p4800_p2)
}
  0xc6   : > { %s4804_s4 = scalar_lea.vmem %s731_s0, 16  ;;  %s4811_s25 = scalar_lea.vmem %s731_s0, 32 }
  0xc7   : > { %p4805_p5 = scmp.ne.s32.totalorder %s731_s0, %s4804_s4  ;;  %p4812_p10 = scmp.lt.s32.totalorder %s731_s0, %s731_s0 }
  0xc8   : > { %p4813_p11 = scmp.lt.s32.totalorder %s4811_s25, %s4804_s4 }
  0xc9   : > { %p4807_p7 = pnand %p4805_p5, %p5352_p8 }
  0xca   : > { %p4814_p12 = por %p4813_p11, %p4812_p10 }
  0xcb   : > { %p4808_p9 = pneg %p4807_p7 }
  0xcd   : > { %p4815_p4 = pnand %p4814_p12, %p4808_p9 }
  0xcf   : > { %4818 = shalt.err (!%p4815_p4)
}
  0xd0   : > { %4483 = dma.hbm_to_vmem [thread:$0]  (!%p5338_p6), %s6206_s15, 16, %s731_s0, [#allocation21]  }
  0xd1   : > { %s6207_s30 = sld [smem:[#allocation44_spill]] }
  0xd7   : > { %s4819_s10 = scalar_lea.hbm %s6207_s30, 16 }
  0xd8   : > { %p4820_p13 = scmp.ne.s32.totalorder %s6207_s30, %s4819_s10  ;;  %p4826_p3 = scmp.lt.u32.totalorder %s4819_s10, %s6207_s30 }
  0xda   : > { %p4822_p0 = pnand %p4820_p13, %p5352_p8 }
  0xdc   : > { %p4823_p1 = pneg %p4822_p0 }
  0xde   : > { %p4828_p2 = pnand %p4826_p3, %p4823_p1 }
  0xe0   : > { %4831 = shalt.err (!%p4828_p2)
}
  0xe1   : > { %s4832_s25 = scalar_lea.vmem %s645_s19, 16  ;;  %s4839_s0 = scalar_lea.vmem %s645_s19, 32 }
  0xe2   : > { %p4833_p5 = scmp.ne.s32.totalorder %s645_s19, %s4832_s25  ;;  %p4840_p10 = scmp.lt.s32.totalorder %s645_s19, %s645_s19 }
  0xe3   : > { %p4841_p11 = scmp.lt.s32.totalorder %s4839_s0, %s4832_s25 }
  0xe4   : > { %p4835_p7 = pnand %p4833_p5, %p5352_p8 }
  0xe5   : > { %p4842_p12 = por %p4841_p11, %p4840_p10 }
  0xe6   : > { %p4836_p9 = pneg %p4835_p7 }
  0xe8   : > { %p4843_p4 = pnand %p4842_p12, %p4836_p9 }
  0xea   : > { %4846 = shalt.err (!%p4843_p4)
}
  0xeb   : > { %4462 = dma.hbm_to_vmem [thread:$0]  (!%p5338_p6), %s6207_s30, 16, %s645_s19, [#allocation9]  }
  0xec   : > { %s5156_s21 = smov [#allocation13]   ;;  %s5157_s10 = smov [#allocation16]  }
  0xed   : > { %s668_s2 = sshll.u32 %s5156_s21, 4  ;;  %s692_s8 = sshll.u32 %s5157_s10, 4  ;;  %s669_s2 = int_to_ptr.vmem [resolvable:$true] %s668_s2  ;;  %s693_s8 = int_to_ptr.vmem [resolvable:$true] %s692_s8 }
  0xee   : > { %s6208_s9 = sld [smem:[#allocation46_spill]] }
  0xf4   : > { %s4847_s4 = scalar_lea.hbm %s6208_s9, 16 }
  0xf5   : > { %p4848_p13 = scmp.ne.s32.totalorder %s6208_s9, %s4847_s4  ;;  %p4854_p3 = scmp.lt.u32.totalorder %s4847_s4, %s6208_s9 }
  0xf7   : > { %p4850_p0 = pnand %p4848_p13, %p5352_p8 }
  0xf9   : > { %p4851_p1 = pneg %p4850_p0 }
  0xfb   : > { %p4856_p2 = pnand %p4854_p3, %p4851_p1 }
  0xfd   : > { %4859 = shalt.err (!%p4856_p2)
}
  0xfe   : > { %s4860_s19 = scalar_lea.vmem %s669_s2, 16  ;;  %s4867_s24 = scalar_lea.vmem %s669_s2, 32 }
  0xff   : > { %p4861_p5 = scmp.ne.s32.totalorder %s669_s2, %s4860_s19  ;;  %p4868_p10 = scmp.lt.s32.totalorder %s669_s2, %s669_s2 }
 0x100   : > { %p4869_p11 = scmp.lt.s32.totalorder %s4867_s24, %s4860_s19 }
 0x101   : > { %p4863_p7 = pnand %p4861_p5, %p5352_p8 }
 0x102   : > { %p4870_p12 = por %p4869_p11, %p4868_p10 }
 0x103   : > { %p4864_p9 = pneg %p4863_p7 }
 0x105   : > { %p4871_p4 = pnand %p4870_p12, %p4864_p9 }
 0x107   : > { %4874 = shalt.err (!%p4871_p4)
}
 0x108   : > { %4468 = dma.hbm_to_vmem [thread:$0]  (!%p5338_p6), %s6208_s9, 16, %s669_s2, [#allocation12]  }
 0x109   : > { %s6209_s12 = sld [smem:[#allocation49_spill]] }
 0x10f   : > { %s4875_s6 = scalar_lea.hbm %s6209_s12, 512 }
 0x110   : > { %p4876_p13 = scmp.ne.s32.totalorder %s6209_s12, %s4875_s6  ;;  %p4882_p3 = scmp.lt.u32.totalorder %s4875_s6, %s6209_s12 }
 0x112   : > { %p4878_p0 = pnand %p4876_p13, %p5352_p8 }
 0x114   : > { %p4879_p1 = pneg %p4878_p0 }
 0x116   : > { %p4884_p2 = pnand %p4882_p3, %p4879_p1 }
 0x118   : > { %4887 = shalt.err (!%p4884_p2)
}
 0x119   : > { %s4888_s19 = scalar_lea.vmem %s693_s8, 512  ;;  %p4896_p10 = scmp.lt.s32.totalorder %s693_s8, %s693_s8 }
 0x11a   : > { %p4889_p5 = scmp.ne.s32.totalorder %s693_s8, %s4888_s19  ;;  %p4897_p11 = scmp.lt.s32.totalorder %s4888_s19, %s4888_s19 }
 0x11c   : > { %p4891_p7 = pnand %p4889_p5, %p5352_p8  ;;  %p4898_p12 = por %p4897_p11, %p4896_p10 }
 0x11e   : > { %p4892_p9 = pneg %p4891_p7 }
 0x120   : > { %p4899_p4 = pnand %p4898_p12, %p4892_p9 }
 0x122   : > { %4902 = shalt.err (!%p4899_p4)
}
 0x123   : > { %s6210_s2 = smov 128   ;;  %s5158_s10 = smov [#allocation19]  }
 0x124   : > { %4474 = dma.hbm_to_vmem [thread:$0]  (!%p5338_p6), %s6209_s12, 512, %s693_s8, [#allocation15], %s6210_s2, %s6210_s2, %s5151_s18  }
 0x125   : > { %s716_s22 = sshll.u32 %s5158_s10, 4  ;;  %s5159_s20 = smov [#allocation22]   ;;  %s717_s22 = int_to_ptr.vmem [resolvable:$true] %s716_s22 }
 0x126   : > { %s740_s6 = sshll.u32 %s5159_s20, 4  ;;  %s6211_s14 = sld [smem:[#allocation51_spill]]  ;;  %s741_s6 = int_to_ptr.vmem [resolvable:$true] %s740_s6 }
 0x12c   : > { %s4903_s0 = scalar_lea.hbm %s6211_s14, 512 }
 0x12d   : > { %p4904_p13 = scmp.ne.s32.totalorder %s6211_s14, %s4903_s0  ;;  %p4910_p3 = scmp.lt.u32.totalorder %s4903_s0, %s6211_s14 }
 0x12f   : > { %p4906_p0 = pnand %p4904_p13, %p5352_p8 }
 0x131   : > { %p4907_p1 = pneg %p4906_p0 }
 0x133   : > { %p4912_p2 = pnand %p4910_p3, %p4907_p1 }
 0x135   : > { %4915 = shalt.err (!%p4912_p2)
}
 0x136   : > { %s4916_s8 = scalar_lea.vmem %s717_s22, 512  ;;  %p4924_p10 = scmp.lt.s32.totalorder %s717_s22, %s717_s22 }
 0x137   : > { %p4917_p5 = scmp.ne.s32.totalorder %s717_s22, %s4916_s8  ;;  %p4925_p11 = scmp.lt.s32.totalorder %s4916_s8, %s4916_s8 }
 0x139   : > { %p4919_p7 = pnand %p4917_p5, %p5352_p8  ;;  %p4926_p12 = por %p4925_p11, %p4924_p10 }
 0x13b   : > { %p4920_p9 = pneg %p4919_p7 }
 0x13d   : > { %p4927_p4 = pnand %p4926_p12, %p4920_p9 }
 0x13f   : > { %4930 = shalt.err (!%p4927_p4)
}
 0x140   : > { %4480 = dma.hbm_to_vmem [thread:$0]  (!%p5338_p6), %s6211_s14, 512, %s717_s22, [#allocation18], %s6210_s2, %s6210_s2, %s5151_s18  }
 0x141   : > { %s4931_s4 = scalar_lea.hbm %s6140_s16, 512 }
 0x142   : > { %p4932_p13 = scmp.ne.s32.totalorder %s6140_s16, %s4931_s4  ;;  %p4938_p3 = scmp.lt.u32.totalorder %s4931_s4, %s6140_s16 }
 0x144   : > { %p4934_p0 = pnand %p4932_p13, %p5352_p8 }
 0x146   : > { %p4935_p1 = pneg %p4934_p0 }
 0x148   : > { %p4940_p2 = pnand %p4938_p3, %p4935_p1 }
 0x14a   : > { %4943 = shalt.err (!%p4940_p2)
}
 0x14b   : > { %s4944_s24 = scalar_lea.vmem %s741_s6, 512  ;;  %p4952_p10 = scmp.lt.s32.totalorder %s741_s6, %s741_s6 }
 0x14c   : > { %p4945_p5 = scmp.ne.s32.totalorder %s741_s6, %s4944_s24  ;;  %p4953_p11 = scmp.lt.s32.totalorder %s4944_s24, %s4944_s24 }
 0x14e   : > { %p4947_p7 = pnand %p4945_p5, %p5352_p8  ;;  %p4954_p12 = por %p4953_p11, %p4952_p10 }
 0x150   : > { %p4948_p9 = pneg %p4947_p7 }
 0x152   : > { %p4955_p4 = pnand %p4954_p12, %p4948_p9 }
 0x154   : > { %4958 = shalt.err (!%p4955_p4)
}
 0x155   : > { %4486 = dma.hbm_to_vmem [thread:$0]  (!%p5338_p6), %s6140_s16, 512, %s741_s6, [#allocation21], %s6210_s2, %s6210_s2, %s5151_s18  }
 0x156   : > { %s5160_s1 = smov [#allocation23]   ;;  %s4959_s4 = scalar_lea.hbm %s6141_s17, 16 }
 0x157   : > { %s754_s21 = sshll.u32 %s5160_s1, 4  ;;  %p4960_p13 = scmp.ne.s32.totalorder %s6141_s17, %s4959_s4  ;;  %s755_s21 = int_to_ptr.vmem [resolvable:$true] %s754_s21 }
 0x158   : > { %p4966_p3 = scmp.lt.u32.totalorder %s4959_s4, %s6141_s17 }
 0x159   : > { %p4962_p0 = pnand %p4960_p13, %p5352_p8 }
 0x15b   : > { %p4963_p1 = pneg %p4962_p0 }
 0x15d   : > { %p4968_p2 = pnand %p4966_p3, %p4963_p1 }
 0x15f   : > { %4971 = shalt.err (!%p4968_p2)
}
 0x160   : > { %s4972_s18 = scalar_lea.vmem %s755_s21, 16  ;;  %s4979_s2 = scalar_lea.vmem %s755_s21, 32 }
 0x161   : > { %p4973_p5 = scmp.ne.s32.totalorder %s755_s21, %s4972_s18  ;;  %p4980_p10 = scmp.lt.s32.totalorder %s755_s21, %s755_s21 }
 0x162   : > { %p4981_p11 = scmp.lt.s32.totalorder %s4979_s2, %s4972_s18 }
 0x163   : > { %p4975_p7 = pnand %p4973_p5, %p5352_p8 }
 0x164   : > { %p4982_p12 = por %p4981_p11, %p4980_p10 }
 0x165   : > { %p4976_p9 = pneg %p4975_p7 }
 0x167   : > { %p4983_p4 = pnand %p4982_p12, %p4976_p9 }
 0x169   : > { %4986 = shalt.err (!%p4983_p4)
}
 0x16a   : > { %4489 = dma.hbm_to_vmem [thread:$0]  (!%p5338_p6), %s6141_s17, 16, %s755_s21, [#allocation24]  }
 0x16b   : > { %s3896_s7 = sadd.s32 4294967294, %s5145_s28   ;;  %s5599_s3 = sadd.s32 1, %s5145_s28  }
 0x16c   : > { %s53_s22 = ssub.s32 %s5145_s28, %s5599_s3  ;;  %s56_s8 = sadd.s32 1, %s5141_s27 }
 0x16d   : > { %p54_p8 = scmp.eq.s32.totalorder %s53_s22, 0  ;;  %p63_p13 = scmp.ne.s32.totalorder %s5141_s27, %s5137_s26 }
 0x16e   : > { %p64_p0 = scmp.eq.s32.totalorder %s5145_s28, 0  ;;  %p69_p1 = scmp.ne.s32.totalorder %s5137_s26, %s5133_s5 }
 0x16f   : > { %s5610_s1 = scalar_select %p54_p8, %s5141_s27, %s56_s8  }
 0x170   : > { %p5612_p3 = por %p64_p0, %p63_p13  ;;  %p6213_p2 = scmp.eq.s32.totalorder %s5320_s29, 0 }
 0x171   : > { %p591_p5 = scmp.eq.s32.totalorder %s5320_s29, 1  ;;  %p597_p7 = scmp.eq.s32.totalorder %s3896_s7, 1 }
 0x172   : > { %p5618_p6 = por %p6213_p2, %p69_p1  ;;  %p4513_p9 = scmp.lt.s32.totalorder %s5145_s28, 2 }
 0x173   : > { %s783_s20 = sand.u32 1, %s5141_s27   ;;  %p5625_p10 = por %p591_p5, %p63_p13 }
 0x174   : > { %s6214_s21 = scalar_select %p5618_p6, 1, 0 }
 0x175   : > { %s6215_s4 = scalar_select %p5625_p10, 1, 0 }
 0x176   : > { %p5629_p11 = por %p597_p7, %p69_p1  ;;  %s5633_s0 = sshll.u32 %s783_s20, 3 }
 0x177   : > { %s3912_s23 = sshll.u32 %s5145_s28, 7  ;;  %s6217_s2 = sld [smem:[#allocation37_spill]] }
 0x178   : > { %s6216_s25 = scalar_select %p5629_p11, 1, 0 }
 0x179   : > { %s787_s24 = scalar_lea.vmem [#allocation2], %s5633_s0  ;;  %p5646_p12 = pnand %p4513_p9, %p5612_p3 }
 0x17a   : > { %s794_s7 = sshll.u32 %s787_s24, 4  ;;  %s6219_s11 = sld [smem:[#allocation38_spill]]  ;;  %s5642_s7 = int_to_ptr.vmem [resolvable:$true] %s794_s7 }
 0x17b   : > { %s801_s18 = sand.u32 1, %s5145_s28   ;;  %s784_s12 = scalar_lea.sflag [#allocation3], %s783_s20 }
 0x17c   : > { %p4989_p8 = pneg %p5646_p12 }
 0x17d   : > { %s5639_s6 = scalar_lea.hbm %s6217_s2, %s3912_s23  ;;  %s4992_s14 = scalar_lea.hbm %s6217_s2, 256 }
 0x17e   : > { %s4987_s13 = scalar_lea.hbm %s5639_s6, 128  ;;  %p4993_p1 = scmp.lt.u32.totalorder %s5639_s6, %s6217_s2 }
 0x17f   : > { %p4988_p4 = scmp.ne.s32.totalorder %s5639_s6, %s4987_s13  ;;  %p4994_p3 = scmp.lt.u32.totalorder %s4992_s14, %s4987_s13 }
 0x180   : > { %s5653_s19 = scalar_lea.hbm %s6219_s11, %s3912_s23  ;;  %p4996_p5 = scmp.lt.u32.totalorder %s4987_s13, %s5639_s6 }
 0x181   : > { %p4990_p13 = pnand %p4989_p8, %p4988_p4  ;;  %p4995_p2 = por %p4994_p3, %p4993_p1 }
 0x183   : > { %p4991_p0 = pneg %p4990_p13  ;;  %p4997_p7 = por %p4996_p5, %p4995_p2 }
 0x185   : > { %p4998_p9 = pnand %p4997_p7, %p4991_p0 }
 0x187   : > { %5001 = shalt.err (!%p4998_p9)
}
 0x188   : > { %s5002_s20 = scalar_lea.vmem %s5642_s7, 128  ;;  %s5161_s23 = smov [#allocation2]  }
 0x189   : > { %p5003_p4 = scmp.ne.s32.totalorder %s5642_s7, %s5002_s20  ;;  %s5007_s8 = sshll.u32 %s5161_s23, 4  ;;  %s5008_s8 = int_to_ptr.vmem [resolvable:$false] %s5007_s8 }
 0x18a   : > { %s5009_s15 = scalar_lea.vmem %s5008_s8, 256  ;;  %p5010_p10 = scmp.lt.s32.totalorder %s5642_s7, %s5008_s8 }
 0x18b   : > { %p5005_p13 = pnand %p5003_p4, %p4989_p8  ;;  %p5011_p1 = scmp.lt.s32.totalorder %s5009_s15, %s5002_s20 }
 0x18d   : > { %p5006_p11 = pneg %p5005_p13  ;;  %p5012_p3 = por %p5011_p1, %p5010_p10 }
 0x18f   : > { %p5013_p2 = pnand %p5012_p3, %p5006_p11 }
 0x191   : > { %5016 = shalt.err (!%p5013_p2)
}
 0x192   : > { %4493 = dma.hbm_to_vmem [thread:$0]  (!%p5646_p12), %s5639_s6, 128, %s5642_s7, %s784_s12  }
 0x193   : > { %s805_s13 = scalar_lea.vmem [#allocation5], %s5633_s0  ;;  %s802_s10 = scalar_lea.sflag [#allocation6], %s801_s18 }
 0x194   : > { %s812_s14 = sshll.u32 %s805_s13, 4  ;;  %s5017_s24 = scalar_lea.hbm %s5653_s19, 128  ;;  %s813_s14 = int_to_ptr.vmem [resolvable:$true] %s812_s14 }
 0x195   : > { %p5018_p10 = scmp.ne.s32.totalorder %s5653_s19, %s5017_s24  ;;  %s5022_s23 = scalar_lea.hbm %s6219_s11, 256 }
 0x196   : > { %p5023_p5 = scmp.lt.u32.totalorder %s5653_s19, %s6219_s11  ;;  %p5024_p7 = scmp.lt.u32.totalorder %s5022_s23, %s5017_s24 }
 0x197   : > { %p5020_p11 = pnand %p5018_p10, %p4989_p8  ;;  %p5026_p4 = scmp.lt.u32.totalorder %s5017_s24, %s5653_s19 }
 0x198   : > { %p5025_p9 = por %p5024_p7, %p5023_p5 }
 0x199   : > { %p5021_p0 = pneg %p5020_p11 }
 0x19a   : > { %p5027_p13 = por %p5026_p4, %p5025_p9 }
 0x19c   : > { %p5028_p1 = pnand %p5027_p13, %p5021_p0 }
 0x19e   : > { %5031 = shalt.err (!%p5028_p1)
}
 0x19f   : > { %s5032_s12 = scalar_lea.vmem %s813_s14, 128  ;;  %s5162_s0 = smov [#allocation5]  }
 0x1a0   : > { %p5033_p3 = scmp.ne.s32.totalorder %s813_s14, %s5032_s12  ;;  %s5037_s6 = sshll.u32 %s5162_s0, 4  ;;  %s5038_s6 = int_to_ptr.vmem [resolvable:$false] %s5037_s6 }
 0x1a1   : > { %s5039_s7 = scalar_lea.vmem %s5038_s6, 256  ;;  %p5040_p11 = scmp.lt.s32.totalorder %s813_s14, %s5038_s6 }
 0x1a2   : > { %p5035_p2 = pnand %p5033_p3, %p4989_p8  ;;  %p5041_p6 = scmp.lt.s32.totalorder %s5039_s7, %s5032_s12 }
 0x1a4   : > { %p5036_p10 = pneg %p5035_p2  ;;  %p5042_p5 = por %p5041_p6, %p5040_p11 }
 0x1a6   : > { %p5043_p7 = pnand %p5042_p5, %p5036_p10 }
 0x1a8   : > { %5046 = shalt.err (!%p5043_p7)
}
 0x1a9   : > { %4496 = dma.hbm_to_vmem [thread:$0]  (!%p5646_p12), %s5653_s19, 128, %s813_s14, %s802_s10  }
 0x1aa   : > { %s6220_s18 = sld [smem:[#allocation36_spill]] }
 0x1b0   : > { %p6221_p0 = scmp.ne.s32.totalorder %s6220_s18, 0 }
 0x1b1   : > { %s5706_s13 = sand.u32 (!%p6221_p0), 1, %s5137_s26   ;;  %p6222_p6 = scmp.ne.s32.totalorder (!%p6221_p0), %s6214_s21, 0 }
 0x1b2   : > { %837 = sbr.rel (%p6221_p0) target bundleno = 7219 (0x1c33), region = 116  ;;  %s5709_s24 = sshll.u32 (!%p6221_p0), %s5706_s13, 3 }
 0x1b3   : > { %s840_s9 = scalar_lea.sflag (!%p6221_p0), [#allocation3], %s5706_s13  ;;  %s843_s20 = scalar_lea.vmem (!%p6221_p0), [#allocation2], %s5709_s24 }
 0x1b9   : > { %5092 = dma.done.wait (%p6222_p6), %s840_s9, 128  }
 0x1ba   : > { %5094 = vsyncadd (%p6222_p6), %s840_s9, 4294967168  ;;  %s848_s22 = sand.u32 1, %s5320_s29   ;;  %s852_s14 = scalar_lea.vmem [#allocation5], %s5709_s24 }
 0x1bb   : > { %s849_s19 = scalar_lea.sflag [#allocation6], %s848_s22 }
 0x1bc   : > { %5096 = dma.done.wait (%p6222_p6), %s849_s19, 128  }
 0x1bd   : > { %5098 = vsyncadd (%p6222_p6), %s849_s19, 4294967168  ;;  %p6223_p12 = scmp.eq.s32.totalorder %s5320_s29, 0 }
 0x1bf   : > { %5100 = dma.done.wait (%p6223_p12), [#allocation6], 16   ;;  %p6224_p8 = pmov %p6223_p12 }
 0x1c1   : > { %5102 = vsyncadd (%p6224_p8), [#allocation6], 4294967280  ;;  %p6225_p9 = pmov %p6224_p8 }
 0x1c2   : > { %p6226_p4 = pmov %p6224_p8 }
 0x1c3   : > { %5104 = dma.done.wait (%p6225_p9), [#allocation9], 528  }
 0x1c4   : > { %5106 = vsyncadd (%p6226_p4), [#allocation9], 4294966768  ;;  %p6227_p13 = pmov %p6226_p4 }
 0x1c5   : > { %p6228_p1 = pmov %p6226_p4 }
 0x1c6   : > { %5108 = dma.done.wait (%p6227_p13), [#allocation12], 528  }
 0x1c7   : > { %5110 = vsyncadd (%p6228_p1), [#allocation12], 4294966768  ;;  %p6229_p3 = pmov %p6228_p1 }
 0x1c8   : > { %p6230_p2 = pmov %p6228_p1 }
 0x1c9   : > { %5112 = dma.done.wait (%p6229_p3), [#allocation15], 528  }
 0x1ca   : > { %5114 = vsyncadd (%p6230_p2), [#allocation15], 4294966768  ;;  %p6231_p10 = pmov %p6228_p1 }
 0x1cb   : > { %p6232_p11 = pmov %p6228_p1 }
 0x1cc   : > { %5116 = dma.done.wait (%p6231_p10), [#allocation18], 528  }
 0x1cd   : > { %5118 = vsyncadd (%p6232_p11), [#allocation18], 4294966768  ;;  %p6233_p5 = pmov %p6228_p1 }
 0x1ce   : > { %p6234_p7 = pmov %p6228_p1 }
 0x1cf   : > { %5120 = dma.done.wait (%p6233_p5), [#allocation21], 528  }
 0x1d0   : > { %5122 = vsyncadd (%p6234_p7), [#allocation21], 4294966768  ;;  %p6235_p0 = pmov %p6228_p1 }
 0x1d2   : > { %5124 = dma.done.wait (%p6235_p0), [#allocation24], 16   ;;  %p6236_p6 = pmov %p6235_p0 }
 0x1d3   : > { %v5163_v0 = vmov 0.0|0.0   ;;  %vm5164_vm0 = vmmov 0   ;;  %v5165_v1 = vmov 0.0   ;;  %s6237_s23 = sld [smem:[#allocation41_spill]]  ;;  %v5771_v8 = vld [vmem:[%s843_s20] sm:$0xff]  ;;  %v5775_v9 = vld [vmem:[%s852_s14] sm:$0xff] }
 0x1d4   : > { %5126 = vsyncadd (%p6236_p6), [#allocation24], 4294967280  ;;  %4319 = vmatprep.subr.bf16.mxu0 %v5163_v0  ;;  %4106 = vmatprep.mubr.msk.f32.mxu0 %vm5164_vm0, %v5165_v1  ;;  %v996_v10 = vadd.f32 %v5775_v9, %v5771_v8  ;;  %vm1008_vm1 = vcmask 261120   ;;  %v3935_v11 = vld [vmem:[#allocation7] ss:$0 sm:$0xff]  ;;  %s5166_s18 = smov 88  }
 0x1d5   : > { %4325 = vmatprep.subr.bf16.mxu1 %v5163_v0  ;;  %4117 = vmatprep.mubr.msk.f32.mxu1 %vm5164_vm0, %v5165_v1  ;;  %s5167_s9 = smov 96   ;;  %vm1170_vm2 = vcmask 64512   ;;  %v1082_v16 = vld [vmem:[#allocation8] sm:$0xff]  ;;  %v1083_v17 = vld [vmem:[#allocation8 + $0x8] sm:$0xff]  ;;  %v1084_v18 = vld [vmem:[#allocation8 + $0x10] sm:$0xff]  ;;  %s5168_s20 = smov 120  }
 0x1d6   : > { %v4326_v19 = vpack.c.bf16 %v1083_v17, %v1082_v16  ;;  %v1085_v20 = vld [vmem:[#allocation8 + $0x18] sm:$0xff]  ;;  %v3937_v31 = vld [vmem:[#allocation10] ss:$0 sm:$0xff]  ;;  %s5169_s22 = smov 112   ;;  %s5170_s19 = smov 80   ;;  %v1498_v51 = vld [vmem:[#allocation11 + $0x8] sm:$0xff] }
 0x1d7   : > { %v4329_v21 = vpack.c.bf16 %v1085_v20, %v1084_v18  ;;  %v1330_v56 = vld [vmem:[#allocation11] sm:$0xff]  ;;  %s5171_s14 = smov 104   ;;  %s5172_s21 = smov 72   ;;  %vm5915_vm3 = vmpackc.low %vm1170_vm2, %vm1170_vm2  ;;  %vm2513_vm4 = vcmask 130048   ;;  %vm3550_vm5 = vcmask 523264  }
 0x1d8   : > { %4327 = vmatpush3.bf16.msra.mxu1 %v4326_v19  ;;  %p980_p12 = scmp.lt.s32.totalorder %s5320_s29, 1  ;;  %s6238_s0 = sld [smem:[#allocation39_spill]] }
 0x1d9   : > { %v997_v2 = vld [vmem:[%s6237_s23] sm:$0xff]  ;;  %v998_v3 = vld [vmem:[%s6237_s23 + $0x8] sm:$0xff]  ;;  %v999_v4 = vld [vmem:[%s6237_s23 + $0x10] sm:$0xff]  ;;  %4328 = vmatprep.subr.bf16.mxu1 %v5163_v0  ;;  %s6242_s12 = sld [smem:[#allocation58_spill]]  ;;  %s6247_s2 = sld [smem:[#allocation54_spill]] }
 0x1da   : > { %v4320_v5 = vpack.c.bf16 %v998_v3, %v997_v2  ;;  %v1000_v6 = vld [vmem:[%s6237_s23 + $0x18] sm:$0xff]  ;;  %s981_s10 = scalar_select %p980_p12, %s5320_s29, 1 }
 0x1db   : > { %v4323_v7 = vpack.c.bf16 %v1000_v6, %v999_v4  ;;  %s979_s15 = scalar_lea.vmem [#allocation25], %s5709_s24  ;;  %s3652_s7 = scalar_lea.sflag [#allocation4], %s5706_s13 }
 0x1dc   : > { %4321 = vmatpush3.bf16.msra.mxu0 %v4320_v5  ;;  %4330 = vmatpush3.bf16.msra.mxu1 %v4329_v21  ;;  %s3999_s8 = sshll.u32 %s981_s10, 4  ;;  %s3996_s10 = sshll.u32 %s5320_s29, 7 }
 0x1dd   : > { %4322 = vmatprep.subr.bf16.mxu0 %v5163_v0  ;;  %4135 = vmatprep.subr.mxu1 %v5165_v1  ;;  %p6250_p9 = scmp.ne.s32.totalorder %s6215_s4, 0  ;;  %s5173_s29 = smov [#allocation25]  }
 0x1de   : > { %s984_s6 = scalar_lea.vmem %s6238_s0, %s3999_s8  ;;  %s5051_s24 = sshll.u32 %s5173_s29, 4  ;;  %s5052_s24 = int_to_ptr.vmem [resolvable:$false] %s5051_s24 }
 0x1df   : > { %4118 = vmatmul.mubr.msk.f32.vlgmr.msra.gmra.mrb[0].mxu1 %vm1008_vm1, %v5771_v8 }
 0x1e0   : > { %4324 = vmatpush3.bf16.msra.mxu0 %v4323_v7  ;;  %4137 = vmatprep.mubr.msk.f32.mxu1 %vm5164_vm0, %v5165_v1 }
 0x1e1   : > { %4120 = vmatprep.subr.mxu0 %v5165_v1 }
 0x1e3   : > { %4107 = vmatmul.mubr.msk.f32.vlgmr.msra.gmra.mrb[0].mxu0 %vm1008_vm1, %v996_v10 }
 0x1e4   : > { %4122 = vmatprep.mubr.msk.f32.mxu0 %vm5164_vm0, %v5165_v1 }
 0x2b2   : > { %v1162_v32 = vpop.f32.mrb[0].mxu1 }
 0x2b3   : > { %v5804_v33 = vadd.f32 %v3937_v31, %v1162_v32  ;;  %v4119_v34 = vpop.f32.mrb[1].mxu1 }
 0x2b6   : > { %v1078_v12 = vpop.f32.mrb[0].mxu0 }
 0x2b7   : > { %v5784_v13 = vadd.f32 %v3935_v11, %v1078_v12  ;;  %v4108_v14 = vpop.f32.mrb[1].mxu0 }
 0x2b9   : > { %1333 = vrot.lane.b32.xlu1 %v5784_v13, %s5166_s18  ;;  %1168 = vrot.lane.b32.xlu0 %v5784_v13, %s5167_s9  ;;  %s6239_s9 = sld [smem:[#allocation40_spill]] }
 0x32b   : > { %v1169_v15 = vpop.permute.xlu0 %1168  ;;  %v1334_v35 = vpop.permute.xlu1 %1333 }
 0x32c   : > { %4121 = vmatpush3.xpose.msk.msra.mxu0 %vm1170_vm2, %v1169_v15 }
 0x32d   : > { %4125 = vmatprep.subr.mxu0 %v5165_v1 }
 0x32f   : > { %4123 = vmatmul.mubr.msk.f32.vlgmr.msra.gmra.mrb[2].mxu0 %vm1170_vm2, %v5784_v13 }
 0x330   : > { %4127 = vmatprep.mubr.msk.f32.mxu0 %vm5164_vm0, %v5165_v1  ;;  %4126 = vmatpush3.msra.mxu0 %v5804_v33 }
 0x331   : > { %4130 = vmatprep.subr.mxu0 %v5165_v1 }
 0x402   : > { %v1241_v22 = vpop.f32.mrb[2].mxu0 }
 0x403   : > { %v1245_v23 = vmul.f32 0.35355338, %v1241_v22  ;;  %v4124_v24 = vpop.f32.mrb[3].mxu0 }
 0x405   : > { %v1246_v25 = vsel %vm1170_vm2, %v1245_v23, -inf }
 0x406   : > { %1247 = vmax.xlane.f32.xlu0 %v1246_v25 }
 0x493   : > { %v1248_v26 = vpop.xlane.xlu0 %1247 }
 0x494   : > { %v1249_v27 = vsub.f32 %v1245_v23, %v1248_v26 }
 0x496   : > { %v1250_v28 = vmul.f32 1.442695, %v1249_v27 }
 0x498   : > { %4613 = vpow2.f32 %v1250_v28 }
 0x4a2   : > { %v4614_v29 = vpop.eup %4613 }
 0x4a3   : > { %v1252_v30 = vsel %vm1170_vm2, %v4614_v29, 0.0 }
 0x4a4   : > { %1253 = vadd.xlane.f32.xlu1 %v1252_v30 }
 0x4b5   : > { %1331 = vrot.lane.b32.xlu1 %v5784_v13, %s5168_s20 }
 0x531   : > { %v1254_v36 = vpop.xlane.xlu1 %1253 }
 0x532   : > { %4615 = vrcp.f32 %v1254_v36 }
 0x535   : > { %v1332_v39 = vpop.permute.xlu1 %1331 }
 0x53c   : > { %v4616_v37 = vpop.eup %4615 }
 0x53d   : > { %v1256_v38 = vmul.f32 %v4616_v37, %v4614_v29 }
 0x53f   : > { %4128 = vmatmul.mubr.msk.f32.vlgmr.msra.gmra.mrb[4].mxu0 %vm1170_vm2, %v1256_v38 }
 0x540   : > { %4131 = vmatpush3.xpose.msk.msra.mxu0 %vm1170_vm2, %v1334_v35  ;;  %4132 = vmatprep.mubr.msk.f32.mxu0 %vm5164_vm0, %v5165_v1  ;;  %v2052_v35 = vld [vmem:[#allocation11 + $0x18] sm:$0xff] }
 0x541   : > { %4140 = vmatprep.subr.mxu0 %v5165_v1 }
 0x543   : > { %4133 = vmatmul.mubr.msk.f32.vlgmr.msra.gmra.mrb[6].mxu0 %vm1170_vm2, %v1332_v39 }
 0x544   : > { %4142 = vmatprep.mubr.msk.f32.mxu0 %vm5164_vm0, %v5165_v1  ;;  %4141 = vmatpush3.msra.mxu0 %v1498_v51 }
 0x545   : > { %4150 = vmatprep.subr.mxu0 %v5165_v1 }
 0x612   : > { %v1326_v40 = vpop.f32.mrb[4].mxu0 }
 0x613   : > { %v4129_v41 = vpop.f32.mrb[5].mxu0 }
 0x616   : > { %v1405_v42 = vpop.f32.mrb[6].mxu0 }
 0x617   : > { %v1409_v43 = vmul.f32 0.35355338, %v1405_v42  ;;  %v4134_v44 = vpop.f32.mrb[7].mxu0 }
 0x619   : > { %v1410_v45 = vsel %vm1170_vm2, %v1409_v43, -inf }
 0x61a   : > { %1411 = vmax.xlane.f32.xlu1 %v1410_v45 }
 0x62b   : > { %1645 = vrot.lane.b32.xlu1 %v5784_v13, %s5169_s22 }
 0x6a7   : > { %v1412_v46 = vpop.xlane.xlu1 %1411 }
 0x6a8   : > { %v1413_v47 = vsub.f32 %v1409_v43, %v1412_v46  ;;  %v3955_v43 = vld [vmem:[#allocation13] ss:$0 sm:$0xff] }
 0x6aa   : > { %v1414_v48 = vmul.f32 1.442695, %v1413_v47 }
 0x6ab   : > { %v1646_v60 = vpop.permute.xlu1 %1645 }
 0x6ac   : > { %4617 = vpow2.f32 %v1414_v48 }
 0x6b6   : > { %v4618_v49 = vpop.eup %4617 }
 0x6b7   : > { %v1416_v50 = vsel %vm1170_vm2, %v4618_v49, 0.0 }
 0x6b8   : > { %1417 = vadd.xlane.f32.xlu0 %v1416_v50 }
 0x6ce   : > { %1422 = vrot.lane.b32.xlu0 %v5804_v33, %s5168_s20 }
 0x6d2   : > { %1647 = vrot.lane.b32.xlu0 %v5784_v13, %s5170_s19  ;;  %s989_s19 = scalar_lea.vmem %s6239_s9, %s3999_s8  ;;  %s6240_s8 = sld [smem:[#allocation47_spill]] }
 0x6d3   : > { %s5053_s9 = scalar_lea.vmem %s5052_s24, 256 }
 0x745   : > { %v1418_v52 = vpop.xlane.xlu0 %1417 }
 0x746   : > { %4619 = vrcp.f32 %v1418_v52 }
 0x749   : > { %v1423_v53 = vpop.permute.xlu0 %1422 }
 0x74a   : > { %4136 = vmatpush3.msra.mxu1 %v1423_v53 }
 0x74b   : > { %4145 = vmatprep.subr.mxu1 %v5165_v1 }
 0x74d   : > { %v1648_v58 = vpop.permute.xlu0 %1647 }
 0x750   : > { %v4620_v54 = vpop.eup %4619 }
 0x751   : > { %v1420_v55 = vmul.f32 %v4620_v54, %v4618_v49 }
 0x753   : > { %4138 = vmatmul.mubr.msk.f32.vlgmr.msra.gmra.mrb[2].mxu1 %vm1170_vm2, %v1420_v55  ;;  %v2248_v55 = vld [vmem:[#allocation16] sm:$0xff] }
 0x754   : > { %4146 = vmatpush3.msra.mxu1 %v1330_v56  ;;  %4147 = vmatprep.mubr.msk.f32.mxu1 %vm5164_vm0, %v5165_v1  ;;  %v2249_v56 = vld [vmem:[#allocation16 + $0x8] sm:$0xff] }
 0x755   : > { %4155 = vmatprep.subr.mxu1 %v5165_v1 }
 0x757   : > { %4148 = vmatmul.mubr.msk.f32.vlgmr.msra.gmra.mrb[4].mxu1 %vm1170_vm2, %v1326_v40 }
 0x758   : > { %4157 = vmatprep.mubr.msk.f32.mxu1 %vm5164_vm0, %v5165_v1 }
 0x826   : > { %v1494_v57 = vpop.f32.mrb[2].mxu1 }
 0x827   : > { %v4139_v59 = vpop.f32.mrb[3].mxu1  ;;  %4143 = vmatmul.mubr.msk.f32.vlgmr.msra.gmra.mrb[8].mxu0 %vm1170_vm2, %v1494_v57  ;;  %v4337_v57 = vpack.c.bf16 %v2249_v56, %v2248_v55  ;;  %v3963_v56 = vld [vmem:[#allocation20] ss:$0 sm:$0xff] }
 0x828   : > { %4151 = vmatpush3.xpose.msk.msra.mxu0 %vm1170_vm2, %v1648_v58  ;;  %4152 = vmatprep.mubr.msk.f32.mxu0 %vm5164_vm0, %v5165_v1  ;;  %v2250_v58 = vld [vmem:[#allocation16 + $0x10] sm:$0xff]  ;;  %v2251_v59 = vld [vmem:[#allocation16 + $0x18] sm:$0xff] }
 0x829   : > { %4160 = vmatprep.subr.mxu0 %v5165_v1 }
 0x82a   : > { %v1641_v61 = vpop.f32.mrb[4].mxu1 }
 0x82b   : > { %v4149_v62 = vpop.f32.mrb[5].mxu1  ;;  %4153 = vmatmul.mubr.msk.f32.vlgmr.msra.gmra.mrb[10].mxu0 %vm1170_vm2, %v1646_v60  ;;  %v992_v60 = vld [vmem:[%s984_s6] sm:$0xff] }
 0x82c   : > { %4162 = vmatprep.mubr.msk.f32.mxu0 %vm5164_vm0, %v5165_v1  ;;  %v5880_v62 = vld [vmem:[%s984_s6 + $0x8] sm:$0xff]  ;;  %s6248_s6 = sld [smem:[#allocation56_spill]] }
 0x8fa   : > { %v1568_v63 = vpop.f32.mrb[8].mxu0 }
 0x8fb   : > { %v1642_v2 = vadd.f32 %v1641_v61, %v1568_v63  ;;  %v4144_v3 = vpop.f32.mrb[9].mxu0  ;;  %v994_v61 = vld [vmem:[%s989_s19] sm:$0xff]  ;;  %v995_v63 = vld [vmem:[%s989_s19 + $0x8] sm:$0xff] }
 0x8fc   : > { %v2247_v3 = vadd.f32 %v995_v63, %v5880_v62 }
 0x8fe   : > { %v1719_v4 = vpop.f32.mrb[10].mxu0 }
 0x8ff   : > { %v1723_v5 = vmul.f32 0.35355338, %v1719_v4  ;;  %v4154_v6 = vpop.f32.mrb[11].mxu0  ;;  %v2162_v4 = vld [vmem:[%s6240_s8] sm:$0xff] }
 0x901   : > { %v1724_v7 = vsel %vm1170_vm2, %v1723_v5, -inf }
 0x902   : > { %1725 = vmax.xlane.f32.xlu0 %v1724_v7  ;;  %v2164_v7 = vld [vmem:[%s6240_s8 + $0x10] sm:$0xff] }
 0x918   : > { %1735 = vrot.lane.b32.xlu0 %v5804_v33, %s5169_s22 }
 0x91c   : > { %1886 = vrot.lane.b32.xlu0 %v5784_v13, %s5171_s14 }
 0x98f   : > { %v1726_v10 = vpop.xlane.xlu0 %1725 }
 0x990   : > { %v1727_v11 = vsub.f32 %v1723_v5, %v1726_v10  ;;  %v2163_v5 = vld [vmem:[%s6240_s8 + $0x8] sm:$0xff]  ;;  %v2165_v10 = vld [vmem:[%s6240_s8 + $0x18] sm:$0xff] }
 0x991   : > { %v4332_v6 = vpack.c.bf16 %v2163_v5, %v2162_v4 }
 0x992   : > { %v1728_v12 = vmul.f32 1.442695, %v1727_v11  ;;  %v4335_v11 = vpack.c.bf16 %v2165_v10, %v2164_v7 }
 0x993   : > { %v1736_v14 = vpop.permute.xlu0 %1735 }
 0x994   : > { %4621 = vpow2.f32 %v1728_v12  ;;  %4156 = vmatpush3.msra.mxu1 %v1736_v14 }
 0x995   : > { %4165 = vmatprep.subr.mxu1 %v5165_v1 }
 0x997   : > { %v1887_v21 = vpop.permute.xlu0 %1886 }
 0x99e   : > { %v4622_v15 = vpop.eup %4621 }
 0x99f   : > { %v1730_v16 = vsel %vm1170_vm2, %v4622_v15, 0.0 }
 0x9a0   : > { %1731 = vadd.xlane.f32.xlu1 %v1730_v16 }
 0x9b1   : > { %1888 = vrot.lane.b32.xlu1 %v5784_v13, %s5172_s21  ;;  %v1811_v13 = vld [vmem:[#allocation11 + $0x10] sm:$0xff]  ;;  %s6241_s21 = sld [smem:[#allocation57_spill]] }
 0x9b2   : > { %4161 = vmatpush3.msra.mxu0 %v1811_v13 }
 0x9b3   : > { %4170 = vmatprep.subr.mxu0 %v5165_v1 }
 0xa2d   : > { %v1732_v17 = vpop.xlane.xlu1 %1731 }
 0xa2e   : > { %4623 = vrcp.f32 %v1732_v17  ;;  %v3956_v17 = vld [vmem:[%s6241_s21] ss:$0 sm:$0xff] }
 0xa31   : > { %v1889_v20 = vpop.permute.xlu1 %1888 }
 0xa38   : > { %v4624_v18 = vpop.eup %4623 }
 0xa39   : > { %v1734_v19 = vmul.f32 %v4624_v18, %v4622_v15 }
 0xa3b   : > { %4158 = vmatmul.mubr.msk.f32.vlgmr.msra.gmra.mrb[6].mxu1 %vm1170_vm2, %v1734_v19  ;;  %v3957_v19 = vld [vmem:[%s6242_s12] ss:$0 sm:$0xff] }
 0xa3c   : > { %4166 = vmatpush3.xpose.msk.msra.mxu1 %vm1170_vm2, %v1889_v20  ;;  %4167 = vmatprep.mubr.msk.f32.mxu1 %vm5164_vm0, %v5165_v1 }
 0xa3d   : > { %4175 = vmatprep.subr.mxu1 %v5165_v1 }
 0xa3f   : > { %4168 = vmatmul.mubr.msk.f32.vlgmr.msra.gmra.mrb[8].mxu1 %vm1170_vm2, %v1887_v21 }
 0xa40   : > { %4177 = vmatprep.mubr.msk.f32.mxu1 %vm5164_vm0, %v5165_v1  ;;  %4176 = vmatpush3.msra.mxu1 %v2052_v35 }
 0xa41   : > { %4338 = vmatprep.subr.bf16.mxu1 %v4337_v57 }
 0xb0e   : > { %v1807_v22 = vpop.f32.mrb[6].mxu1 }
 0xb0f   : > { %v4159_v23 = vpop.f32.mrb[7].mxu1  ;;  %4163 = vmatmul.mubr.msk.f32.vlgmr.msra.gmra.mrb[12].mxu0 %vm1170_vm2, %v1807_v22  ;;  %v3960_v22 = vld [vmem:[#allocation17] ss:$0 sm:$0xff] }
 0xb10   : > { %4172 = vmatprep.mubr.msk.f32.mxu0 %vm5164_vm0, %v5165_v1 }
 0xb12   : > { %v1960_v24 = vpop.f32.mrb[8].mxu1 }
 0xb13   : > { %v1964_v25 = vmul.f32 0.35355338, %v1960_v24  ;;  %v4169_v26 = vpop.f32.mrb[9].mxu1 }
 0xb15   : > { %v1965_v27 = vsel %vm1170_vm2, %v1964_v25, -inf }
 0xb16   : > { %1966 = vmax.xlane.f32.xlu0 %v1965_v27 }
 0xb2c   : > { %1976 = vrot.lane.b32.xlu0 %v5804_v33, %s5171_s14 }
 0xba3   : > { %v1967_v28 = vpop.xlane.xlu0 %1966 }
 0xba4   : > { %v1968_v29 = vsub.f32 %v1964_v25, %v1967_v28 }
 0xba6   : > { %v1969_v30 = vmul.f32 1.442695, %v1968_v29 }
 0xba7   : > { %v1977_v31 = vpop.permute.xlu0 %1976 }
 0xba8   : > { %4625 = vpow2.f32 %v1969_v30  ;;  %4171 = vmatpush3.msra.mxu0 %v1977_v31 }
 0xba9   : > { %4331 = vmatprep.subr.bf16.mxu0 %v5163_v0 }
 0xbb2   : > { %v4626_v32 = vpop.eup %4625 }
 0xbb3   : > { %v1971_v34 = vsel %vm1170_vm2, %v4626_v32, 0.0 }
 0xbb4   : > { %1972 = vadd.xlane.f32.xlu1 %v1971_v34 }
 0xbe2   : > { %v1881_v36 = vpop.f32.mrb[12].mxu0 }
 0xbe3   : > { %v1885_v37 = vadd.f32 %v1881_v36, %v1642_v2  ;;  %v4164_v38 = vpop.f32.mrb[13].mxu0  ;;  %v2246_v2 = vadd.f32 %v994_v61, %v992_v60 }
 0xbe4   : > { %v2340_v38 = vld [vmem:[#allocation19] sm:$0xff] }
 0xc41   : > { %v1973_v39 = vpop.xlane.xlu1 %1972 }
 0xc42   : > { %4627 = vrcp.f32 %v1973_v39  ;;  %v2341_v39 = vld [vmem:[#allocation19 + $0x8] sm:$0xff] }
 0xc4c   : > { %v4628_v33 = vpop.eup %4627 }
 0xc4d   : > { %v1975_v40 = vmul.f32 %v4628_v33, %v4626_v32  ;;  %v3958_v32 = vld [vmem:[#allocation14] ss:$0 sm:$0xff]  ;;  %v2342_v33 = vld [vmem:[#allocation19 + $0x10] sm:$0xff] }
 0xc4f   : > { %4173 = vmatmul.mubr.msk.f32.vlgmr.msra.gmra.mrb[14].mxu0 %vm1170_vm2, %v1975_v40  ;;  %v4345_v40 = vpack.c.bf16 %v2341_v39, %v2340_v38 }
 0xc50   : > { %4188 = vmatprep.mubr.msk.f32.mxu0 %vm5164_vm0, %v5165_v1  ;;  %4333 = vmatpush3.bf16.msra.mxu0 %v4332_v6 }
 0xc51   : > { %4334 = vmatprep.subr.bf16.mxu0 %v5163_v0 }
 0xc54   : > { %4336 = vmatpush3.bf16.msra.mxu0 %v4335_v11  ;;  %v2598_v11 = vld [vmem:[#allocation22] sm:$0xff] }
 0xc55   : > { %4346 = vmatprep.subr.bf16.mxu0 %v4345_v40 }
 0xd22   : > { %v2048_v41 = vpop.f32.mrb[14].mxu0 }
 0xd23   : > { %v4174_v42 = vpop.f32.mrb[15].mxu0  ;;  %4178 = vmatmul.mubr.msk.f32.vlgmr.msra.gmra.mrb[10].mxu1 %vm1170_vm2, %v2048_v41  ;;  %v2343_v41 = vld [vmem:[#allocation19 + $0x18] sm:$0xff] }
 0xd24   : > { %4340 = vmatpush3.bf16.msra.mxu1 %v4337_v57  ;;  %4199 = vmatprep.mubr.msk.f32.mxu1 %vm1008_vm1, %v2246_v2  ;;  %v4349_v42 = vpack.c.bf16 %v2343_v41, %v2342_v33 }
 0xdf6   : > { %v2122_v44 = vpop.f32.mrb[10].mxu1 }
 0xdf7   : > { %v2126_v45 = vadd.f32 %v2122_v44, %v1885_v37  ;;  %v4179_v46 = vpop.f32.mrb[11].mxu1 }
 0xdf9   : > { %v2133_v47 = vadd.f32 %v3955_v43, %v2126_v45 }
 0xdfb   : > { %v2134_v48 = vadd.f32 %v2133_v47, %v5771_v8  ;;  %v4341_v8 = vpack.c.bf16 %v2251_v59, %v2250_v58 }
 0xdfd   : > { %v2137_v49 = vsel %vm1008_vm1, %v2134_v48, 0.0  ;;  %4342 = vmatprep.subr.bf16.mxu1 %v4341_v8 }
 0xdfe   : > { %2138 = vadd.xlane.f32.xlu1 %v2137_v49  ;;  %4344 = vmatpush3.bf16.msra.mxu1 %v4341_v8 }
 0xdff   : > { %4353 = vmatprep.subr.bf16.mxu1 %v5163_v0 }
 0xe01   : > { %4200 = vmatmul.mubr.msk.f32.vlgmr.msra.gmra.mrb[12].mxu1 %vm1008_vm1, %v2247_v3 }
 0xe02   : > { %4217 = vmatprep.mubr.msk.f32.mxu1 %vm5164_vm0, %v5165_v1 }
 0xe8b   : > { %v2139_v50 = vpop.xlane.xlu1 %2138 }
 0xe8c   : > { %v2141_v51 = vmul.f32 0.03125, %v2139_v50 }
 0xe8e   : > { %v2142_v52 = vsub.f32 %v2134_v48, %v2141_v51 }
 0xe90   : > { %v2143_v53 = vmul.f32 %v2142_v52, %v2142_v52 }
 0xe92   : > { %v2144_v54 = vsel %vm1008_vm1, %v2143_v53, 0.0 }
 0xe93   : > { %2145 = vadd.xlane.f32.xlu1 %v2144_v54 }
 0xed4   : > { %v4201_v23 = vpop.f32.mrb[12].mxu1 }
 0xed5   : > { %v2337_v24 = vadd.f32 %v4201_v23, %v3960_v22  ;;  %v2331_v25 = vpop.f32.mrb[13].mxu1 }
 0xed6   : > { %v2332_v26 = vadd.f32 %v3960_v22, %v2331_v25 }
 0xed8   : > { %v4354_v28 = vpack.c.bf16 %v2337_v24, %v2332_v26  ;;  %v5919_v29 = vpack.i.bf16 %v2337_v24, %v2332_v26 }
 0xeda   : > { %4584 = vrot.lane.b32.xlu0 %v5919_v29, %s5168_s20  ;;  %4356 = vmatpush3.bf16.xpose.msk.msra.mxu1 %vm5915_vm3, %v4354_v28 }
 0xedb   : > { %4360 = vmatprep.subr.bf16.mxu1 %v5163_v0 }
 0xf20   : > { %v2146_v12 = vpop.xlane.xlu1 %2145 }
 0xf21   : > { %v2147_v14 = vmul.f32 0.03125, %v2146_v12 }
 0xf23   : > { %v2148_v15 = vadd.f32 1e-05, %v2147_v14 }
 0xf25   : > { %4629 = vrsqrt.f32 %v2148_v15 }
 0xf2f   : > { %v4630_v16 = vpop.eup %4629 }
 0xf30   : > { %v2150_v18 = vmul.f32 %v4630_v16, %v2142_v52 }
 0xf32   : > { %v2155_v20 = vmul.f32 %v3956_v17, %v2150_v18 }
 0xf34   : > { %v5907_v21 = vadd.f32 %v3957_v19, %v2155_v20  ;;  %v2774_v20 = vld [vmem:[#allocation22 + $0x8] sm:$0xff] }
 0xf36   : > { %v2161_v13 = vadd.f32 %v5907_v21, %v5775_v9 }
 0xf38   : > { %4189 = vmatmul.mubr.msk.f32.vlgmr.msra.gmra.mrb[16].mxu0 %vm1008_vm1, %v2161_v13 }
 0xf39   : > { %4210 = vmatprep.mubr.msk.f32.mxu0 %vm1008_vm1, %v992_v60  ;;  %4348 = vmatpush3.bf16.msra.mxu0 %v4345_v40 }
 0xf3a   : > { %4350 = vmatprep.subr.bf16.mxu0 %v4349_v42 }
 0xf3d   : > { %4352 = vmatpush3.bf16.msra.mxu0 %v4349_v42 }
 0xf3e   : > { %4357 = vmatprep.subr.bf16.mxu0 %v5163_v0 }
 0xf40   : > { %4211 = vmatmul.mubr.msk.f32.vlgmr.msra.gmra.mrb[18].mxu0 %vm1008_vm1, %v5880_v62 }
 0xf41   : > { %4224 = vmatprep.mubr.msk.f32.mxu0 %vm5164_vm0, %v5165_v1 }
 0xf4c   : > { %v4585_v9 = vpop.permute.xlu0 %4584 }
 0xf4d   : > { %v4587_v30 = vunpack.i.h.bf16 %v4585_v9  ;;  %v4586_v31 = vunpack.i.l.bf16 %v4585_v9 }
 0xf4f   : > { %v4361_v35 = vpack.c.bf16 %v4587_v30, %v4586_v31 }
0x100b   : > { %v2242_v34 = vpop.f32.mrb[16].mxu0 }
0x100c   : > { %v2243_v36 = vadd.f32 %v3958_v32, %v2242_v34  ;;  %v4190_v37 = vpop.f32.mrb[17].mxu0 }
0x100e   : > { %2599 = vrot.lane.b32.xlu1 %v2243_v36, %s5168_s20  ;;  %4218 = vmatmul.mubr.msk.f32.vlgmr.msra.gmra.mrb[14].mxu1 %vm1170_vm2, %v2243_v36 }
0x100f   : > { %4363 = vmatpush3.bf16.xpose.msk.msra.mxu1 %vm5915_vm3, %v4361_v35  ;;  %4231 = vmatprep.mubr.msk.f32.mxu1 %vm5164_vm0, %v5165_v1 }
0x1010   : > { %4246 = vmatprep.subr.mxu1 %v5165_v1 }
0x1013   : > { %v4212_v55 = vpop.f32.mrb[18].mxu0 }
0x1014   : > { %v2429_v57 = vadd.f32 %v4212_v55, %v3963_v56  ;;  %v2423_v58 = vpop.f32.mrb[19].mxu0 }
0x1015   : > { %v2424_v59 = vadd.f32 %v3963_v56, %v2423_v58 }
0x1017   : > { %v5946_v8 = vpack.i.bf16 %v2429_v57, %v2424_v59  ;;  %v4358_v62 = vpack.c.bf16 %v2429_v57, %v2424_v59 }
0x1019   : > { %4359 = vmatpush3.bf16.msra.mxu0 %v4358_v62 }
0x101a   : > { %4364 = vmatprep.subr.bf16.mxu0 %v5163_v0 }
0x1080   : > { %v2600_v43 = vpop.permute.xlu1 %2599 }
0x1081   : > { %4232 = vmatmul.mubr.msk.f32.vlgmr.msra.gmra.mrb[16].mxu1 %vm1170_vm2, %v2600_v43 }
0x1082   : > { %4248 = vmatprep.mubr.msk.f32.mxu1 %vm5164_vm0, %v5165_v1  ;;  %4247 = vmatpush3.msra.mxu1 %v2598_v11 }
0x1083   : > { %4371 = vmatprep.subr.bf16.mxu1 %v5163_v0 }
0x10e1   : > { %v2508_v44 = vpop.f32.mrb[14].mxu1 }
0x10e2   : > { %v2512_v45 = vmul.f32 0.35355338, %v2508_v44  ;;  %v4219_v46 = vpop.f32.mrb[15].mxu1 }
0x10e4   : > { %v2514_v47 = vsel %vm2513_vm4, %v2512_v45, -inf }
0x10e5   : > { %2515 = vmax.xlane.f32.xlu0 %v2514_v47 }
0x1154   : > { %v2677_v48 = vpop.f32.mrb[16].mxu1 }
0x1155   : > { %v2681_v49 = vmul.f32 0.35355338, %v2677_v48  ;;  %v4233_v50 = vpop.f32.mrb[17].mxu1 }
0x1157   : > { %v2682_v51 = vsel %vm2513_vm4, %v2681_v49, -inf }
0x1158   : > { %2683 = vmax.xlane.f32.xlu1 %v2682_v51 }
0x1169   : > { %4594 = vrot.lane.b32.xlu1 %v5919_v29, %s5169_s22 }
0x116d   : > { %3169 = vrot.lane.b32.xlu1 %v2243_v36, %s5171_s14 }
0x1172   : > { %v2516_v52 = vpop.xlane.xlu0 %2515 }
0x1173   : > { %v2517_v53 = vsub.f32 %v2512_v45, %v2516_v52 }
0x1175   : > { %v2518_v54 = vmul.f32 1.442695, %v2517_v53 }
0x1177   : > { %4631 = vpow2.f32 %v2518_v54 }
0x1181   : > { %v4632_v60 = vpop.eup %4631 }
0x1182   : > { %v2520_v61 = vsel %vm2513_vm4, %v4632_v60, 0.0 }
0x1183   : > { %2521 = vadd.xlane.f32.xlu0 %v2520_v61 }
0x11e5   : > { %v2684_v63 = vpop.xlane.xlu1 %2683 }
0x11e6   : > { %v2685_v2 = vsub.f32 %v2681_v49, %v2684_v63 }
0x11e8   : > { %v2686_v3 = vmul.f32 1.442695, %v2685_v2  ;;  %v3094_v2 = vld [vmem:[#allocation22 + $0x10] sm:$0xff] }
0x11e9   : > { %v4595_v23 = vpop.permute.xlu1 %4594 }
0x11ea   : > { %4633 = vpow2.f32 %v2686_v3  ;;  %v4597_v25 = vunpack.i.h.bf16 %v4595_v23  ;;  %v4596_v26 = vunpack.i.l.bf16 %v4595_v23 }
0x11ec   : > { %v4368_v28 = vpack.c.bf16 %v4597_v25, %v4596_v26 }
0x11ed   : > { %v3170_v35 = vpop.permute.xlu1 %3169 }
0x11f4   : > { %v4634_v4 = vpop.eup %4633 }
0x11f5   : > { %v2688_v5 = vsel %vm2513_vm4, %v4634_v4, 0.0 }
0x11f6   : > { %2689 = vadd.xlane.f32.xlu0 %v2688_v5 }
0x120c   : > { %4589 = vrot.lane.b32.xlu0 %v5946_v8, %s5168_s20  ;;  %s6246_s20 = sld [smem:[#allocation55_spill]] }
0x1210   : > { %v2522_v6 = vpop.xlane.xlu0 %2521  ;;  %2921 = vrot.lane.b32.xlu0 %v2243_v36, %s5169_s22 }
0x1211   : > { %4635 = vrcp.f32 %v2522_v6 }
0x1214   : > { %4599 = vrot.lane.b32.xlu0 %v5919_v29, %s5171_s14 }
0x121b   : > { %v4636_v7 = vpop.eup %4635 }
0x121c   : > { %v2524_v10 = vmul.f32 %v4636_v7, %v4632_v60 }
0x121e   : > { %4225 = vmatmul.mubr.msk.f32.vlgmr.msra.gmra.mrb[20].mxu0 %vm2513_vm4, %v2524_v10 }
0x121f   : > { %4238 = vmatprep.mubr.msk.f32.mxu0 %vm5164_vm0, %v5165_v1 }
0x1283   : > { %v2690_v12 = vpop.xlane.xlu0 %2689 }
0x1284   : > { %4637 = vrcp.f32 %v2690_v12 }
0x1287   : > { %v4590_v14 = vpop.permute.xlu0 %4589 }
0x1288   : > { %v4592_v15 = vunpack.i.h.bf16 %v4590_v14  ;;  %v4591_v16 = vunpack.i.l.bf16 %v4590_v14  ;;  %v3342_v14 = vld [vmem:[#allocation22 + $0x18] sm:$0xff] }
0x128a   : > { %v4365_v17 = vpack.c.bf16 %v4592_v15, %v4591_v16 }
0x128b   : > { %v2922_v24 = vpop.permute.xlu0 %2921 }
0x128c   : > { %4366 = vmatpush3.bf16.msra.mxu0 %v4365_v17 }
0x128d   : > { %4241 = vmatprep.subr.mxu0 %v5165_v1 }
0x128e   : > { %v4638_v18 = vpop.eup %4637 }
0x128f   : > { %v2692_v19 = vmul.f32 %v4638_v18, %v4634_v4  ;;  %v4600_v9 = vpop.permute.xlu0 %4599 }
0x1290   : > { %v4602_v31 = vunpack.i.h.bf16 %v4600_v9  ;;  %v4601_v32 = vunpack.i.l.bf16 %v4600_v9 }
0x1291   : > { %4239 = vmatmul.mubr.msk.f32.vlgmr.msra.gmra.mrb[22].mxu0 %vm2513_vm4, %v2692_v19 }
0x1292   : > { %4242 = vmatpush3.msra.mxu0 %v2774_v20  ;;  %4243 = vmatprep.mubr.msk.f32.mxu0 %vm5164_vm0, %v5165_v1  ;;  %v4375_v34 = vpack.c.bf16 %v4602_v31, %v4601_v32  ;;  %v3986_v20 = vld [vmem:[#allocation23] ss:$0 sm:$0xff] }
0x1293   : > { %4367 = vmatprep.subr.bf16.mxu0 %v5163_v0 }
0x12f1   : > { %v2594_v13 = vpop.f32.mrb[20].mxu0 }
0x12f2   : > { %v4226_v22 = vpop.f32.mrb[21].mxu0  ;;  %4249 = vmatmul.mubr.msk.f32.vlgmr.msra.gmra.mrb[18].mxu1 %vm1170_vm2, %v2594_v13 }
0x12f3   : > { %4262 = vmatprep.mubr.msk.f32.mxu1 %vm5164_vm0, %v5165_v1 }
0x1364   : > { %v2770_v29 = vpop.f32.mrb[22].mxu0 }
0x1365   : > { %v4240_v30 = vpop.f32.mrb[23].mxu0  ;;  %4244 = vmatmul.mubr.msk.f32.vlgmr.msra.gmra.mrb[24].mxu0 %vm1170_vm2, %v2770_v29 }
0x1366   : > { %4370 = vmatpush3.bf16.xpose.msk.msra.mxu0 %vm5915_vm3, %v4368_v28  ;;  %4255 = vmatprep.mubr.msk.f32.mxu0 %vm5164_vm0, %v5165_v1 }
0x1367   : > { %4374 = vmatprep.subr.bf16.mxu0 %v5163_v0 }
0x136d   : > { %4256 = vmatmul.mubr.msk.f32.vlgmr.msra.gmra.mrb[26].mxu0 %vm1170_vm2, %v2922_v24 }
0x136e   : > { %4377 = vmatpush3.bf16.xpose.msk.msra.mxu0 %vm5915_vm3, %v4375_v34  ;;  %4274 = vmatprep.mubr.msk.f32.mxu0 %vm5164_vm0, %v5165_v1 }
0x136f   : > { %4381 = vmatprep.subr.bf16.mxu0 %v5163_v0 }
0x1375   : > { %4275 = vmatmul.mubr.msk.f32.vlgmr.msra.gmra.mrb[28].mxu0 %vm1170_vm2, %v3170_v35 }
0x1376   : > { %4297 = vmatprep.mubr.msk.f32.mxu0 %vm5164_vm0, %v5165_v1 }
0x13c5   : > { %v2917_v36 = vpop.f32.mrb[18].mxu1 }
0x13c6   : > { %v4250_v37 = vpop.f32.mrb[19].mxu1 }
0x13c7   : > { %v3535_v37 = vld [vmem:[%s6246_s20] sm:$0xff] }
0x1438   : > { %v2844_v38 = vpop.f32.mrb[24].mxu0 }
0x1439   : > { %v5983_v39 = vadd.f32 %v2917_v36, %v2844_v38  ;;  %v4245_v33 = vpop.f32.mrb[25].mxu0  ;;  %v3536_v38 = vld [vmem:[%s6246_s20 + $0x8] sm:$0xff] }
0x143a   : > { %v4388_v33 = vpack.c.bf16 %v3536_v38, %v3535_v37 }
0x1440   : > { %v2999_v40 = vpop.f32.mrb[26].mxu0 }
0x1441   : > { %v3003_v27 = vmul.f32 0.35355338, %v2999_v40  ;;  %v4257_v41 = vpop.f32.mrb[27].mxu0  ;;  %v3538_v40 = vld [vmem:[%s6246_s20 + $0x18] sm:$0xff] }
0x1442   : > { %v3539_v41 = vld [vmem:[%s6246_s20 + $0x20] sm:$0xff] }
0x1443   : > { %v3004_v42 = vsel %vm2513_vm4, %v3003_v27, -inf }
0x1444   : > { %3005 = vmax.xlane.f32.xlu0 %v3004_v42  ;;  %v3540_v42 = vld [vmem:[%s6246_s20 + $0x28] sm:$0xff] }
0x1448   : > { %v3247_v43 = vpop.f32.mrb[28].mxu0 }
0x1449   : > { %v4276_v44 = vpop.f32.mrb[29].mxu0  ;;  %v3251_v53 = vmul.f32 0.35355338, %v3247_v43  ;;  %v4394_v43 = vpack.c.bf16 %v3540_v42, %v3539_v41 }
0x144b   : > { %v3252_v55 = vsel %vm2513_vm4, %v3251_v53, -inf }
0x145a   : > { %4604 = vrot.lane.b32.xlu0 %v5946_v8, %s5169_s22 }
0x14d1   : > { %v3006_v45 = vpop.xlane.xlu0 %3005 }
0x14d2   : > { %v3007_v46 = vsub.f32 %v3003_v27, %v3006_v45 }
0x14d4   : > { %v3008_v47 = vmul.f32 1.442695, %v3007_v46 }
0x14d5   : > { %v4605_v48 = vpop.permute.xlu0 %4604 }
0x14d6   : > { %4639 = vpow2.f32 %v3008_v47  ;;  %v4607_v49 = vunpack.i.h.bf16 %v4605_v48  ;;  %v4606_v50 = vunpack.i.l.bf16 %v4605_v48  ;;  %v3987_v48 = vld [vmem:[%s6241_s21 + $0x1] ss:$0 sm:$0xff] }
0x14d8   : > { %v4372_v51 = vpack.c.bf16 %v4607_v49, %v4606_v50  ;;  %v3988_v50 = vld [vmem:[%s6242_s12 + $0x1] ss:$0 sm:$0xff] }
0x14da   : > { %4373 = vmatpush3.bf16.msra.mxu1 %v4372_v51 }
0x14db   : > { %4265 = vmatprep.subr.mxu1 %v5165_v1 }
0x14e0   : > { %v4640_v52 = vpop.eup %4639 }
0x14e1   : > { %v3010_v54 = vsel %vm2513_vm4, %v4640_v52, 0.0 }
0x14e2   : > { %3011 = vadd.xlane.f32.xlu1 %v3010_v54 }
0x14e6   : > { %3253 = vmax.xlane.f32.xlu1 %v3252_v55  ;;  %v3989_v55 = vld [vmem:[%s6247_s2] ss:$0 sm:$0xff]  ;;  %s3665_s2 = sshll.u32 %s979_s15, 4  ;;  %s6081_s2 = int_to_ptr.vmem [resolvable:$true] %s3665_s2 }
0x14e7   : > { %s5047_s18 = scalar_lea.vmem %s6081_s2, 128  ;;  %p5054_p1 = scmp.lt.s32.totalorder %s6081_s2, %s5052_s24 }
0x14e8   : > { %p5048_p8 = scmp.ne.s32.totalorder %s6081_s2, %s5047_s18  ;;  %p5055_p3 = scmp.lt.s32.totalorder %s5053_s9, %s5047_s18 }
0x14ea   : > { %p5049_p4 = pnand %p5048_p8, %p6250_p9  ;;  %p5056_p2 = por %p5055_p3, %p5054_p1 }
0x14ec   : > { %p5050_p13 = pneg %p5049_p4 }
0x14ee   : > { %p5057_p10 = pnand %p5056_p2, %p5050_p13 }
0x156f   : > { %v3012_v56 = vpop.xlane.xlu1 %3011 }
0x1570   : > { %4641 = vrcp.f32 %v3012_v56 }
0x1573   : > { %v3254_v57 = vpop.xlane.xlu1 %3253 }
0x1574   : > { %v3255_v58 = vsub.f32 %v3251_v53, %v3254_v57  ;;  %v3542_v53 = vld [vmem:[%s6246_s20 + $0x38] sm:$0xff] }
0x1576   : > { %v3256_v59 = vmul.f32 1.442695, %v3255_v58 }
0x1578   : > { %4643 = vpow2.f32 %v3256_v59 }
0x157a   : > { %v4642_v60 = vpop.eup %4641 }
0x157b   : > { %v3014_v61 = vmul.f32 %v4642_v60, %v4640_v52  ;;  %v3991_v60 = vld [vmem:[%s6248_s6] ss:$0 sm:$0xff]  ;;  %s6249_s6 = sld [smem:[#allocation59_spill]] }
0x157d   : > { %4263 = vmatmul.mubr.msk.f32.vlgmr.msra.gmra.mrb[20].mxu1 %vm2513_vm4, %v3014_v61 }
0x157e   : > { %4267 = vmatprep.mubr.msk.f32.mxu1 %vm5164_vm0, %v5165_v1  ;;  %4266 = vmatpush3.msra.mxu1 %v3094_v2 }
0x157f   : > { %4378 = vmatprep.subr.bf16.mxu1 %v5163_v0 }
0x1581   : > { %s6079_s8 = scalar_lea.hbm %s6249_s6, %s3996_s10 }
0x1582   : > { %v4644_v62 = vpop.eup %4643 }
0x1583   : > { %v3258_v63 = vsel %vm2513_vm4, %v4644_v62, 0.0 }
0x1584   : > { %3259 = vadd.xlane.f32.xlu1 %v3258_v63 }
0x1595   : > { %4609 = vrot.lane.b32.xlu1 %v5946_v8, %s5171_s14  ;;  %s6245_s14 = sld [smem:[#allocation53_spill]] }
0x159b   : > { %v3451_v32 = vld [vmem:[%s6245_s14 + $0x8] sm:$0xff]  ;;  %v3453_v35 = vld [vmem:[%s6245_s14 + $0x18] sm:$0xff] }
0x1611   : > { %v3260_v3 = vpop.xlane.xlu1 %3259 }
0x1612   : > { %4645 = vrcp.f32 %v3260_v3 }
0x1615   : > { %v4610_v4 = vpop.permute.xlu1 %4609 }
0x1616   : > { %v4612_v5 = vunpack.i.h.bf16 %v4610_v4  ;;  %v4611_v6 = vunpack.i.l.bf16 %v4610_v4 }
0x1618   : > { %v4379_v10 = vpack.c.bf16 %v4612_v5, %v4611_v6 }
0x161c   : > { %v4646_v7 = vpop.eup %4645 }
0x161d   : > { %v3262_v8 = vmul.f32 %v4646_v7, %v4644_v62 }
0x1650   : > { %v3090_v11 = vpop.f32.mrb[20].mxu1 }
0x1651   : > { %v4264_v12 = vpop.f32.mrb[21].mxu1  ;;  %4268 = vmatmul.mubr.msk.f32.vlgmr.msra.gmra.mrb[22].mxu1 %vm1170_vm2, %v3090_v11 }
0x1652   : > { %4380 = vmatpush3.bf16.msra.mxu1 %v4379_v10  ;;  %4281 = vmatprep.mubr.msk.f32.mxu1 %vm5164_vm0, %v5165_v1 }
0x1653   : > { %4284 = vmatprep.subr.mxu1 %v5165_v1 }
0x1655   : > { %4282 = vmatmul.mubr.msk.f32.vlgmr.msra.gmra.mrb[24].mxu1 %vm2513_vm4, %v3262_v8 }
0x1656   : > { %4286 = vmatprep.mubr.msk.f32.mxu1 %vm5164_vm0, %v5165_v1  ;;  %4285 = vmatpush3.msra.mxu1 %v3342_v14 }
0x1657   : > { %4387 = vmatprep.subr.bf16.mxu1 %v5163_v0 }
0x1724   : > { %v3164_v15 = vpop.f32.mrb[22].mxu1 }
0x1725   : > { %v3168_v16 = vadd.f32 %v3164_v15, %v5983_v39  ;;  %v4269_v17 = vpop.f32.mrb[23].mxu1  ;;  %v3537_v39 = vld [vmem:[%s6246_s20 + $0x10] sm:$0xff]  ;;  %v3993_v15 = vld [vmem:[%s6241_s21 + $0x2] ss:$0 sm:$0xff] }
0x1726   : > { %v4391_v27 = vpack.c.bf16 %v3538_v40, %v3537_v39  ;;  %v3994_v17 = vld [vmem:[%s6242_s12 + $0x2] ss:$0 sm:$0xff] }
0x1728   : > { %v3338_v18 = vpop.f32.mrb[24].mxu1 }
0x1729   : > { %v4283_v19 = vpop.f32.mrb[25].mxu1  ;;  %4287 = vmatmul.mubr.msk.f32.vlgmr.msra.gmra.mrb[26].mxu1 %vm1170_vm2, %v3338_v18 }
0x172a   : > { %4316 = vmatprep.mubr.msk.f32.mxu1 %vm5164_vm0, %v5165_v1  ;;  %v3450_v1 = vld [vmem:[%s6245_s14] sm:$0xff]  ;;  %4389 = vmatpush3.bf16.msra.mxu1 %v4388_v33 }
0x172b   : > { %v4382_v34 = vpack.c.bf16 %v3451_v32, %v3450_v1  ;;  %4390 = vmatprep.subr.bf16.mxu1 %v5163_v0 }
0x172d   : > { %4383 = vmatpush3.bf16.msra.mxu0 %v4382_v34 }
0x172e   : > { %4384 = vmatprep.subr.bf16.mxu0 %v5163_v0  ;;  %4392 = vmatpush3.bf16.msra.mxu1 %v4391_v27 }
0x172f   : > { %4393 = vmatprep.subr.bf16.mxu1 %v5163_v0 }
0x1732   : > { %4395 = vmatpush3.bf16.msra.mxu1 %v4394_v43 }
0x1733   : > { %4396 = vmatprep.subr.bf16.mxu1 %v5163_v0  ;;  %v3541_v0 = vld [vmem:[%s6246_s20 + $0x30] sm:$0xff] }
0x1734   : > { %v4397_v54 = vpack.c.bf16 %v3542_v53, %v3541_v0 }
0x1736   : > { %4398 = vmatpush3.bf16.msra.mxu1 %v4397_v54 }
0x17fc   : > { %v3412_v13 = vpop.f32.mrb[26].mxu1 }
0x17fd   : > { %v3416_v22 = vadd.f32 %v3412_v13, %v3168_v16  ;;  %v4288_v23 = vpop.f32.mrb[27].mxu1 }
0x17ff   : > { %v3423_v24 = vadd.f32 %v3986_v20, %v3416_v22 }
0x1801   : > { %v3424_v25 = vadd.f32 %v3423_v24, %v5907_v21  ;;  %v3452_v21 = vld [vmem:[%s6245_s14 + $0x10] sm:$0xff] }
0x1802   : > { %v4385_v36 = vpack.c.bf16 %v3453_v35, %v3452_v21 }
0x1803   : > { %v3427_v26 = vsel %vm1008_vm1, %v3424_v25, 0.0 }
0x1804   : > { %3428 = vadd.xlane.f32.xlu0 %v3427_v26  ;;  %4386 = vmatpush3.bf16.msra.mxu0 %v4385_v36 }
0x1891   : > { %v3429_v28 = vpop.xlane.xlu0 %3428 }
0x1892   : > { %v3430_v29 = vmul.f32 0.03125, %v3429_v28 }
0x1894   : > { %v3431_v9 = vsub.f32 %v3424_v25, %v3430_v29 }
0x1896   : > { %v3432_v30 = vmul.f32 %v3431_v9, %v3431_v9 }
0x1898   : > { %v3433_v31 = vsel %vm1008_vm1, %v3432_v30, 0.0 }
0x1899   : > { %3434 = vadd.xlane.f32.xlu1 %v3433_v31 }
0x1926   : > { %v3435_v44 = vpop.xlane.xlu1 %3434 }
0x1927   : > { %v3436_v45 = vmul.f32 0.03125, %v3435_v44 }
0x1929   : > { %v3437_v46 = vadd.f32 1e-05, %v3436_v45 }
0x192b   : > { %4647 = vrsqrt.f32 %v3437_v46 }
0x1935   : > { %v4648_v47 = vpop.eup %4647 }
0x1936   : > { %v3439_v49 = vmul.f32 %v4648_v47, %v3431_v9 }
0x1938   : > { %v3444_v51 = vmul.f32 %v3987_v48, %v3439_v49 }
0x193a   : > { %v3449_v52 = vadd.f32 %v3988_v50, %v3444_v51 }
0x193c   : > { %4298 = vmatmul.mubr.msk.f32.vlgmr.msra.gmra.mrb[30].mxu0 %vm1008_vm1, %v3449_v52 }
0x1a0f   : > { %v3530_v56 = vpop.f32.mrb[30].mxu0 }
0x1a10   : > { %v3531_v57 = vadd.f32 %v3989_v55, %v3530_v56  ;;  %v4299_v58 = vpop.f32.mrb[31].mxu0 }
0x1a12   : > { %v3534_v59 = vmax.f32 %v3531_v57, 0.0 }
0x1a14   : > { %4317 = vmatmul.mubr.msk.f32.vlgmr.msra.gmra.mrb[28].mxu1 %vm3550_vm5, %v3534_v59 }
0x1ae7   : > { %v3620_v61 = vpop.f32.mrb[28].mxu1 }
0x1ae8   : > { %v3621_v62 = vadd.f32 %v3991_v60, %v3620_v61  ;;  %v4318_v63 = vpop.f32.mrb[29].mxu1 }
0x1aea   : > { %v3624_v2 = vadd.f32 %v3621_v62, %v3449_v52 }
0x1aec   : > { %v3627_v3 = vsel %vm1008_vm1, %v3624_v2, 0.0 }
0x1aed   : > { %3628 = vadd.xlane.f32.xlu0 %v3627_v3 }
0x1b7a   : > { %v3629_v4 = vpop.xlane.xlu0 %3628 }
0x1b7b   : > { %v3630_v5 = vmul.f32 0.03125, %v3629_v4 }
0x1b7d   : > { %v3631_v6 = vsub.f32 %v3624_v2, %v3630_v5 }
0x1b7f   : > { %v3632_v7 = vmul.f32 %v3631_v6, %v3631_v6 }
0x1b81   : > { %v3633_v10 = vsel %vm1008_vm1, %v3632_v7, 0.0 }
0x1b82   : > { %3634 = vadd.xlane.f32.xlu0 %v3633_v10 }
0x1c0f   : > { %v3635_v11 = vpop.xlane.xlu0 %3634 }
0x1c10   : > { %v3636_v12 = vmul.f32 0.03125, %v3635_v11 }
0x1c12   : > { %v3637_v8 = vadd.f32 1e-05, %v3636_v12 }
0x1c14   : > { %4649 = vrsqrt.f32 %v3637_v8 }
0x1c1e   : > { %v4650_v14 = vpop.eup %4649 }
0x1c1f   : > { %v3639_v16 = vmul.f32 %v4650_v14, %v3631_v6 }
0x1c21   : > { %v3644_v18 = vmul.f32 %v3993_v15, %v3639_v16 }
0x1c23   : > { %v3649_v19 = vadd.f32 %v3994_v17, %v3644_v18 }
0x1c25   : > { %3650 = vst.msk [vmem:[%s979_s15] sm:$0xff] %vm1008_vm1, %v3649_v19 }
0x1c26   : > { %5060 = shalt.err (!%p5057_p10)
}
0x1c27   : > { %s5061_s13 = scalar_lea.hbm %s6079_s8, 128  ;;  %s5065_s15 = scalar_lea.hbm %s6249_s6, 256 }
0x1c28   : > { %p5062_p11 = scmp.ne.s32.totalorder %s6079_s8, %s5061_s13  ;;  %p5066_p0 = scmp.lt.u32.totalorder %s6079_s8, %s6249_s6 }
0x1c29   : > { %p5067_p6 = scmp.lt.u32.totalorder %s5065_s15, %s5061_s13  ;;  %p5069_p8 = scmp.lt.u32.totalorder %s5061_s13, %s6079_s8 }
0x1c2a   : > { %p5063_p5 = pnand %p5062_p11, %p6250_p9 }
0x1c2b   : > { %p5068_p12 = por %p5067_p6, %p5066_p0 }
0x1c2c   : > { %p5064_p7 = pneg %p5063_p5 }
0x1c2d   : > { %p5070_p4 = por %p5069_p8, %p5068_p12 }
0x1c2f   : > { %p5071_p13 = pnand %p5070_p4, %p5064_p7 }
0x1c31   : > { %5074 = shalt.err (!%p5071_p13)
}
0x1c32   : > { %4451 = dma.vmem_to_hbm [thread:$0]  (%p6250_p9), %s6081_s2, 128, %s6079_s8, %s3652_s7  }
0x1c33 PF: > { %s3677_s18 = sand.u32 1, %s5133_s5   ;;  %p6251_p1 = scmp.ne.s32.totalorder %s6216_s25, 0 }
0x1c34   : > { %p6252_p3 = scmp.ge.s32.totalorder %s5145_s28, 2  ;;  %s3678_s29 = scalar_lea.sflag [#allocation4], %s3677_s18 }
0x1c36   : > { %p4498_p2 = pnand %p6252_p3, %p6251_p1 }
0x1c38   : > { %5128 = dma.done.wait (!%p4498_p2), %s3678_s29, 128  }
0x1c39   : > { %5130 = vsyncadd (!%p4498_p2), %s3678_s29, 4294967168  ;;  %p46_p10 = scmp.ge.s32.totalorder %s5599_s3, 4   ;;  %s6253_s5 = smov %s5137_s26 }
0x1c3a   : > { %s6254_s26 = smov %s5141_s27  ;;  %s6255_s27 = smov %s5610_s1 }
0x1c3b   : > { %s6256_s28 = smov %s5599_s3  ;;  %48 = sbr.rel (!%p46_p10) target bundleno = 37 (0x25), region = 228 }
0x1c42   :  { %3683 = vsyncpa [#allocation3], 1 }
0x1c43   :  { %3685 = vsyncpa [#allocation3 + $0x1], 1 }
0x1c44   :  { %3686 = vsyncpa [#allocation6], 1 }
0x1c45   :  { %3688 = vsyncpa [#allocation6 + $0x1], 1 }
0x1c46   :  { %3689 = vsyncpa [#allocation9], 1 }
0x1c47   :  { %3690 = vsyncpa [#allocation12], 1 }
0x1c48   :  { %3691 = vsyncpa [#allocation15], 1 }
0x1c49   :  { %3692 = vsyncpa [#allocation18], 1 }
0x1c4a   :  { %3693 = vsyncpa [#allocation21], 1 }
0x1c4b   :  { %3694 = vsyncpa [#allocation24], 1 }
0x1c4c   :  { %3695 = vsyncpa [#allocation4], 1 }
0x1c4d   :  { %3697 = vsyncpa [#allocation4 + $0x1], 1 }

</bundles_post_ra>
